<compile_context>
chip_gen: v6e
topology: v6e:2x2x1
jax: 0.10.0
libtpu: 0.0.40
codegen_flags: <defaults>
</compile_context>

<pallas_src>
import functools
import numpy as np
import jax
import jax.numpy as jnp
from jax.experimental import pallas as pl
from jax.experimental.pallas import tpu as pltpu

LANE_TILE = 1024            # lane (spatial) tile for GEMM / pooling kernels
ACT_DTYPE = jnp.bfloat16    # storage dtype of intermediate activations


# ---------------------------------------------------------------------------
# Pallas kernels
# ---------------------------------------------------------------------------
def _wxb_kernel(w_ref, b_ref, x_ref, o_ref, *, act):
    # out = W @ X + b (f32 accumulate), optional fused ReLU; lanes = spatial.
    y = jnp.dot(w_ref[...], x_ref[...], preferred_element_type=jnp.float32)
    y = y + b_ref[...]
    if act == "relu":
        y = jnp.maximum(y, 0.0)
    o_ref[...] = y.astype(o_ref.dtype)


def conv_wxb(x, w, b, act="none", out_dtype=jnp.float32, tn=LANE_TILE):
    """x: (N, K, S) (channels/taps on rows, spatial on lanes); w: (Cout, K);
    b: (Cout,).  Returns (N, Cout, S).  Lane-dense GEMM, tiled over (N, S)."""
    N, K, S = x.shape
    Cout = w.shape[0]
    grid = (N, pl.cdiv(S, tn))
    return pl.pallas_call(
        functools.partial(_wxb_kernel, act=act),
        out_shape=jax.ShapeDtypeStruct((N, Cout, S), out_dtype),
        grid=grid,
        in_specs=[
            pl.BlockSpec((Cout, K), lambda n, t: (0, 0)),
            pl.BlockSpec((Cout, 1), lambda n, t: (0, 0)),
            pl.BlockSpec((None, K, tn), lambda n, t: (n, 0, t)),
        ],
        out_specs=pl.BlockSpec((None, Cout, tn), lambda n, t: (n, 0, t)),
        compiler_params=pltpu.CompilerParams(
            dimension_semantics=("parallel", "parallel")),
    )(w, b.reshape(Cout, 1), x)


def _tapmax_kernel(p_ref, o_ref):
    o_ref[...] = jnp.max(p_ref[...], axis=0)


def tap_max(stacked, tl=LANE_TILE):
    """stacked: (N, T, C, S) -> (N, C, S): elementwise max over the tap axis,
    tiled over (batch, spatial) so VMEM use is constant at any image size."""
    N, T, C, S = stacked.shape
    grid = (N, pl.cdiv(S, tl))
    return pl.pallas_call(
        _tapmax_kernel,
        out_shape=jax.ShapeDtypeStruct((N, C, S), stacked.dtype),
        grid=grid,
        in_specs=[pl.BlockSpec((None, T, C, tl), lambda n, t: (n, 0, 0, t))],
        out_specs=pl.BlockSpec((None, C, tl), lambda n, t: (n, 0, t)),
        compiler_params=pltpu.CompilerParams(
            dimension_semantics=("parallel", "parallel")),
    )(stacked)


def _bilinear_kernel(x_ref, a_ref, b_ref, o_ref):
    # Fused separable bilinear upsample, batched over channels (MXU).
    x = x_ref[...].astype(jnp.float32)                # (C, Hp, Wp)
    a = a_ref[...]                                    # (H, Hp) f32
    b = b_ref[...]                                    # (W, Wp) f32
    c, hp, wp = x.shape
    ab = jnp.broadcast_to(a[None], (c, a.shape[0], hp))
    bb = jnp.broadcast_to(b[None], (c, b.shape[0], wp))
    t = jnp.einsum('chw,cpw->chp', x, bb,
                   preferred_element_type=jnp.float32)    # (C, Hp, W)
    y = jnp.einsum('coh,chp->cop', ab, t,
                   preferred_element_type=jnp.float32)    # (C, H, W)
    o_ref[...] = y.astype(o_ref.dtype)


def bilinear_upsample(x, A, B, out_dtype=jnp.float32):
    """x: (N, C, Hp, Wp); A: (H, Hp); B: (W, Wp) -> (N, C, H, W)."""
    N, C, Hp, Wp = x.shape
    H, W = A.shape[0], B.shape[0]
    return pl.pallas_call(
        _bilinear_kernel,
        out_shape=jax.ShapeDtypeStruct((N, C, H, W), out_dtype),
        grid=(N,),
        in_specs=[
            pl.BlockSpec((None, C, Hp, Wp), lambda n: (n, 0, 0, 0)),
            pl.BlockSpec((H, Hp), lambda n: (0, 0)),
            pl.BlockSpec((W, Wp), lambda n: (0, 0)),
        ],
        out_specs=pl.BlockSpec((None, C, H, W), lambda n: (n, 0, 0, 0)),
        compiler_params=pltpu.CompilerParams(dimension_semantics=("parallel",)),
    )(x, A, B)


def _tail_kernel(w_ref, b_ref, a_ref, c_ref, x_ref, o_ref):
    # m = sigmoid(W4 @ (a + c) + b4); out = x * m.
    # Split into two bf16 dots (f32 accumulate) so no bf16 element-wise adds
    # are needed (v5e has no bf16 VALU); sigmoid / gating stay f32.
    w = w_ref[...]
    y = (jnp.dot(w, a_ref[...], preferred_element_type=jnp.float32)
         + jnp.dot(w, c_ref[...], preferred_element_type=jnp.float32)
         + b_ref[...])
    m = jax.nn.sigmoid(y)
    o_ref[...] = (x_ref[...] * m).astype(o_ref.dtype)


def esa_tail(a, c, x, w4, b4, tn=LANE_TILE):
    """a, c: (N, f, S) bf16; x: (N, C, S) f32; returns (N, C, S) f32."""
    N, f_, S = a.shape
    C = w4.shape[0]
    grid = (N, pl.cdiv(S, tn))
    return pl.pallas_call(
        _tail_kernel,
        out_shape=jax.ShapeDtypeStruct((N, C, S), jnp.float32),
        grid=grid,
        in_specs=[
            pl.BlockSpec((C, f_), lambda n, t: (0, 0)),
            pl.BlockSpec((C, 1), lambda n, t: (0, 0)),
            pl.BlockSpec((None, f_, tn), lambda n, t: (n, 0, t)),
            pl.BlockSpec((None, f_, tn), lambda n, t: (n, 0, t)),
            pl.BlockSpec((None, C, tn), lambda n, t: (n, 0, t)),
        ],
        out_specs=pl.BlockSpec((None, C, tn), lambda n, t: (n, 0, t)),
        compiler_params=pltpu.CompilerParams(
            dimension_semantics=("parallel", "parallel")),
    )(w4, b4.reshape(C, 1), a, c, x)


# ---------------------------------------------------------------------------
# Plain-JAX glue (patch extraction, bilinear weights) -- layout only
# ---------------------------------------------------------------------------
def im2col_nchw(x, kh, kw, stride, pad):
    """x: (N, C, H, W) -> (N, C*kh*kw, Ho*Wo); row index = c*kh*kw + ki*kw + kj,
    matching w.reshape(Cout, Cin*kh*kw)."""
    if pad:
        x = jnp.pad(x, ((0, 0), (0, 0), (pad, pad), (pad, pad)))
    N, C, H, W = x.shape
    Ho = (H - kh) // stride + 1
    Wo = (W - kw) // stride + 1
    taps = []
    for i in range(kh):
        for j in range(kw):
            taps.append(x[:, :, i:i + stride * (Ho - 1) + 1:stride,
                          j:j + stride * (Wo - 1) + 1:stride])
    p = jnp.stack(taps, axis=2)                  # (N, C, kh*kw, Ho, Wo)
    return p.reshape(N, C * kh * kw, Ho * Wo), (Ho, Wo)


def bilinear_matrix(out_size, in_size):
    """Interp matrix matching F.interpolate(mode='bilinear', align_corners=False)."""
    scale = in_size / out_size
    A = np.zeros((out_size, in_size), dtype=np.float32)
    for o in range(out_size):
        src = (o + 0.5) * scale - 0.5
        if src < 0.0:
            src = 0.0
        i0 = min(int(np.floor(src)), in_size - 1)
        i1 = min(i0 + 1, in_size - 1)
        l1 = src - i0
        A[o, i0] += 1.0 - l1
        A[o, i1] += l1
    return A


# ---------------------------------------------------------------------------
# ESA forward (Pallas path)
# ---------------------------------------------------------------------------
def esa_forward(x, params):
    N, C, H, W = x.shape
    f = C // 4
    HW = H * W
    adt = ACT_DTYPE

    xs = x.reshape(N, C, HW)                                       # no copy

    # conv1: 1x1, n_feats -> f   (f32 input -> bf16 activation)
    c1_ = conv_wxb(xs, params['w1'].reshape(f, C), params['b1'], out_dtype=adt)

    # conv_f: 1x1, f -> f
    cf = conv_wxb(c1_, params['wf'].reshape(f, f).astype(adt), params['bf'],
                  out_dtype=adt)

    # conv2: 3x3, stride 2, pad 0
    p, (H2, W2) = im2col_nchw(c1_.reshape(N, f, H, W), 3, 3, 2, 0)
    c1 = conv_wxb(p, params['w2'].reshape(f, f * 9).astype(adt), params['b2'],
                  out_dtype=adt)                                   # (N, f, H2*W2)

    # max_pool2d kernel 7, stride 3 -- separable (W taps, then H taps)
    v = c1.reshape(N, f, H2, W2)
    Wp = (W2 - 7) // 3 + 1
    taps = jnp.stack([v[:, :, :, j:j + 3 * (Wp - 1) + 1:3] for j in range(7)],
                     axis=1)                                       # (N,7,f,H2,Wp)
    v = tap_max(taps.reshape(N, 7, f, H2 * Wp)).reshape(N, f, H2, Wp)
    Hp = (H2 - 7) // 3 + 1
    taps = jnp.stack([v[:, :, i:i + 3 * (Hp - 1) + 1:3, :] for i in range(7)],
                     axis=1)                                       # (N,7,f,Hp,Wp)
    v_max = tap_max(taps.reshape(N, 7, f, Hp * Wp))                # (N, f, Hp*Wp)

    # conv_max: 3x3 pad 1 + ReLU
    p, _ = im2col_nchw(v_max.reshape(N, f, Hp, Wp), 3, 3, 1, 1)
    v_range = conv_wxb(p, params['wm'].reshape(f, f * 9).astype(adt),
                       params['bm'], act="relu", out_dtype=adt)

    # conv3: 3x3 pad 1 + ReLU
    p, _ = im2col_nchw(v_range.reshape(N, f, Hp, Wp), 3, 3, 1, 1)
    c3 = conv_wxb(p, params['w3'].reshape(f, f * 9).astype(adt),
                  params['b3'], act="relu", out_dtype=adt)

    # conv3_: 3x3 pad 1
    p, _ = im2col_nchw(c3.reshape(N, f, Hp, Wp), 3, 3, 1, 1)
    c3 = conv_wxb(p, params['w3_'].reshape(f, f * 9).astype(adt),
                  params['b3_'], out_dtype=adt)                    # (N, f, Hp*Wp)

    # bilinear upsample (Hp, Wp) -> (H, W): single fused separable kernel
    A = jnp.asarray(bilinear_matrix(H, Hp))
    B = jnp.asarray(bilinear_matrix(W, Wp))
    c3_up = bilinear_upsample(c3.reshape(N, f, Hp, Wp), A, B,
                              out_dtype=adt).reshape(N, f, HW)

    # fused tail: conv4(c3_up + cf) -> sigmoid -> x * m
    out = esa_tail(c3_up, cf, xs,
                   params['w4'].reshape(C, f).astype(adt), params['b4'])
    return out.reshape(N, C, H, W)


# ---------------------------------------------------------------------------
# Pure-JAX f32 reference (XLA conv / reduce_window) for correctness check
# ---------------------------------------------------------------------------
def _conv_ref(x, w, b, stride=1, pad=0):
    y = jax.lax.conv_general_dilated(
        x, w, window_strides=(stride, stride),
        padding=[(pad, pad), (pad, pad)],
        dimension_numbers=('NCHW', 'OIHW', 'NCHW'))
    return y + b.reshape(1, -1, 1, 1)


def esa_ref(x, P):
    c1_ = _conv_ref(x, P['w1'], P['b1'])
    c1 = _conv_ref(c1_, P['w2'], P['b2'], stride=2, pad=0)
    v_max = jax.lax.reduce_window(c1, -jnp.inf, jax.lax.max,
                                  (1, 1, 7, 7), (1, 1, 3, 3), 'VALID')
    v_range = jax.nn.relu(_conv_ref(v_max, P['wm'], P['bm'], pad=1))
    c3 = jax.nn.relu(_conv_ref(v_range, P['w3'], P['b3'], pad=1))
    c3 = _conv_ref(c3, P['w3_'], P['b3_'], pad=1)
    Hp, Wp = c3.shape[2], c3.shape[3]
    A = jnp.asarray(bilinear_matrix(x.shape[2], Hp))
    B = jnp.asarray(bilinear_matrix(x.shape[3], Wp))
    c3 = jnp.einsum('oh,nchw->ncow', A, c3)
    c3 = jnp.einsum('pw,ncow->ncop', B, c3)
    cf = _conv_ref(c1_, P['wf'], P['bf'])
    c4 = _conv_ref(c3 + cf, P['w4'], P['b4'])
    return x * jax.nn.sigmoid(c4)


# ---------------------------------------------------------------------------
# Deterministic parameter init (PyTorch conv weight layout: OIHW)
# ---------------------------------------------------------------------------
def init_params(key, n_feats):
    f = n_feats // 4
    shapes = {
        'w1': (f, n_feats, 1, 1),
        'wf': (f, f, 1, 1),
        'wm': (f, f, 3, 3),
        'w2': (f, f, 3, 3),
        'w3': (f, f, 3, 3),
        'w3_': (f, f, 3, 3),
        'w4': (n_feats, f, 1, 1),
    }
    params = {}
    for name in sorted(shapes):
        key, k1, k2 = jax.random.split(key, 3)
        shp = shapes[name]
        params[name] = 0.2 * jax.random.normal(k1, shp, jnp.float32)
        params['b' + name[1:]] = 0.1 * jax.random.normal(k2, (shp[0],), jnp.float32)
    return params


if __name__ == "__main__":
    N, n_feats, H, W = 2, 16, 32, 32   # f = n_feats // 4 = 4
    key = jax.random.PRNGKey(0)
    kx, kp = jax.random.split(key)
    x = jax.random.normal(kx, (N, n_feats, H, W), jnp.float32)
    params = init_params(kp, n_feats)

    fwd = jax.jit(esa_forward)
    out = jax.block_until_ready(fwd(x, params))

    ref = esa_ref(x, params)
    # Tolerance covers bf16 storage of intermediate activations (f32 accumulate).
    np.testing.assert_allclose(np.asarray(out), np.asarray(ref),
                               rtol=3e-2, atol=3e-2)
    print("KERNEL_OK")
</pallas_src>

<mosaic_0001>
module attributes {stable_mosaic.version = 11 : i64} {
  func.func @_wxb_kernel(%arg0: i32, %arg1: i32, %arg2: memref<4x16xf32, #tpu.memory_space<vmem>>, %arg3: memref<4x1xf32, #tpu.memory_space<vmem>>, %arg4: memref<1x16x1024xf32, #tpu.memory_space<vmem>>, %arg5: memref<1x4x1024xbf16, #tpu.memory_space<vmem>>) attributes {dimension_semantics = [#tpu.dimension_semantics<parallel>, #tpu.dimension_semantics<parallel>], iteration_bounds = array<i64: 2, 1>, scalar_prefetch = 0 : i64, scratch_operands = 0 : i64, tpu.core_type = #tpu.core_type<tc>, window_params = [{pipeline_mode = #tpu.pipeline_mode<synchronous>, transform_indices = @transform_0, window_bounds = array<i64: 4, 16>}, {pipeline_mode = #tpu.pipeline_mode<synchronous>, transform_indices = @transform_1, window_bounds = array<i64: 4, 1>}, {transform_indices = @transform_2, window_bounds = array<i64: 1, 16, 1024>}, {transform_indices = @transform_3, window_bounds = array<i64: 1, 4, 1024>}]} {
    %c0 = arith.constant 0 : index
    %c0_0 = arith.constant 0 : index
    %0 = vector.load %arg2[%c0, %c0_0] : memref<4x16xf32, #tpu.memory_space<vmem>>, vector<4x16xf32>
    %c0_1 = arith.constant 0 : index
    %c0_2 = arith.constant 0 : index
    %c0_3 = arith.constant 0 : index
    %1 = vector.load %arg4[%c0_1, %c0_2, %c0_3] : memref<1x16x1024xf32, #tpu.memory_space<vmem>>, vector<1x16x1024xf32>
    %2 = vector.shape_cast %1 : vector<1x16x1024xf32> to vector<16x1024xf32>
    %cst = arith.constant dense<0.000000e+00> : vector<4x1024xf32>
    %3 = tpu.matmul %0, %2, %cst {dimension_numbers = #tpu.dot_dimension_numbers<[1], [0], [0], [1], [0, 0, 1, 1], [], []>} : vector<4x16xf32>, vector<16x1024xf32>, vector<4x1024xf32> -> vector<4x1024xf32>
    %c0_4 = arith.constant 0 : index
    %c0_5 = arith.constant 0 : index
    %4 = vector.load %arg3[%c0_4, %c0_5] : memref<4x1xf32, #tpu.memory_space<vmem>>, vector<4x1xf32>
    %5 = vector.broadcast %4 : vector<4x1xf32> to vector<4x1024xf32>
    %6 = arith.addf %3, %5 : vector<4x1024xf32>
    %7 = arith.truncf %6 : vector<4x1024xf32> to vector<4x1024xbf16>
    %c0_6 = arith.constant 0 : index
    %c0_7 = arith.constant 0 : index
    %c0_8 = arith.constant 0 : index
    %8 = vector.load %arg5[%c0_6, %c0_7, %c0_8] : memref<1x4x1024xbf16, #tpu.memory_space<vmem>>, vector<1x4x1024xbf16>
    %9 = vector.shape_cast %8 : vector<1x4x1024xbf16> to vector<4x1024xbf16>
    %10 = vector.shape_cast %7 : vector<4x1024xbf16> to vector<1x4x1024xbf16>
    tpu.vector_store %arg5[%c0_6, %c0_7, %c0_8], %10 {strides = array<i32>} : memref<1x4x1024xbf16, #tpu.memory_space<vmem>>, vector<1x4x1024xbf16>,
    return
  }
  func.func @transform_0(%arg0: i32, %arg1: i32) -> (i32, i32) {
    %c0_i32 = arith.constant 0 : i32
    %c0_i32_0 = arith.constant 0 : i32
    %c0_i32_1 = arith.constant 0 : i32
    return %c0_i32, %c0_i32_0 : i32, i32
  }
  func.func @transform_1(%arg0: i32, %arg1: i32) -> (i32, i32) {
    %c0_i32 = arith.constant 0 : i32
    %c0_i32_0 = arith.constant 0 : i32
    %c0_i32_1 = arith.constant 0 : i32
    return %c0_i32, %c0_i32_0 : i32, i32
  }
  func.func @transform_2(%arg0: i32, %arg1: i32) -> (i32, i32, i32) {
    %c0_i32 = arith.constant 0 : i32
    %c0_i32_0 = arith.constant 0 : i32
    return %arg0, %c0_i32, %arg1 : i32, i32, i32
  }
  func.func @transform_3(%arg0: i32, %arg1: i32) -> (i32, i32, i32) {
    %c0_i32 = arith.constant 0 : i32
    %c0_i32_0 = arith.constant 0 : i32
    return %arg0, %c0_i32, %arg1 : i32, i32, i32
  }
}

module attributes {stable_mosaic.version = 11 : i64} {
  func.func @_wxb_kernel(%arg0: i32, %arg1: i32, %arg2: memref<4x36xbf16, #tpu.memory_space<vmem>>, %arg3: memref<4x1xf32, #tpu.memory_space<vmem>>, %arg4: memref<1x36x1024xbf16, #tpu.memory_space<vmem>>, %arg5: memref<1x4x1024xbf16, #tpu.memory_space<vmem>>) attributes {dimension_semantics = [#tpu.dimension_semantics<parallel>, #tpu.dimension_semantics<parallel>], iteration_bounds = array<i64: 2, 1>, scalar_prefetch = 0 : i64, scratch_operands = 0 : i64, tpu.core_type = #tpu.core_type<tc>, window_params = [{pipeline_mode = #tpu.pipeline_mode<synchronous>, transform_indices = @transform_0, window_bounds = array<i64: 4, 36>}, {pipeline_mode = #tpu.pipeline_mode<synchronous>, transform_indices = @transform_1, window_bounds = array<i64: 4, 1>}, {transform_indices = @transform_2, window_bounds = array<i64: 1, 36, 1024>}, {transform_indices = @transform_3, window_bounds = array<i64: 1, 4, 1024>}]} {
    %c0 = arith.constant 0 : index
    %c0_0 = arith.constant 0 : index
    %0 = vector.load %arg2[%c0, %c0_0] : memref<4x36xbf16, #tpu.memory_space<vmem>>, vector<4x36xbf16>
    %c0_1 = arith.constant 0 : index
    %c0_2 = arith.constant 0 : index
    %c0_3 = arith.constant 0 : index
    %1 = vector.load %arg4[%c0_1, %c0_2, %c0_3] : memref<1x36x1024xbf16, #tpu.memory_space<vmem>>, vector<1x36x1024xbf16>
    %2 = vector.shape_cast %1 : vector<1x36x1024xbf16> to vector<36x1024xbf16>
    %cst = arith.constant dense<0.000000e+00> : vector<4x1024xf32>
    %3 = tpu.matmul %0, %2, %cst {dimension_numbers = #tpu.dot_dimension_numbers<[1], [0], [0], [1], [0, 0, 1, 1], [], []>} : vector<4x36xbf16>, vector<36x1024xbf16>, vector<4x1024xf32> -> vector<4x1024xf32>
    %c0_4 = arith.constant 0 : index
    %c0_5 = arith.constant 0 : index
    %4 = vector.load %arg3[%c0_4, %c0_5] : memref<4x1xf32, #tpu.memory_space<vmem>>, vector<4x1xf32>
    %5 = vector.broadcast %4 : vector<4x1xf32> to vector<4x1024xf32>
    %6 = arith.addf %3, %5 : vector<4x1024xf32>
    %7 = arith.truncf %6 : vector<4x1024xf32> to vector<4x1024xbf16>
    %c0_6 = arith.constant 0 : index
    %c0_7 = arith.constant 0 : index
    %c0_8 = arith.constant 0 : index
    %8 = vector.load %arg5[%c0_6, %c0_7, %c0_8] : memref<1x4x1024xbf16, #tpu.memory_space<vmem>>, vector<1x4x1024xbf16>
    %9 = vector.shape_cast %8 : vector<1x4x1024xbf16> to vector<4x1024xbf16>
    %10 = vector.shape_cast %7 : vector<4x1024xbf16> to vector<1x4x1024xbf16>
    tpu.vector_store %arg5[%c0_6, %c0_7, %c0_8], %10 {strides = array<i32>} : memref<1x4x1024xbf16, #tpu.memory_space<vmem>>, vector<1x4x1024xbf16>,
    return
  }
  func.func @transform_0(%arg0: i32, %arg1: i32) -> (i32, i32) {
    %c0_i32 = arith.constant 0 : i32
    %c0_i32_0 = arith.constant 0 : i32
    %c0_i32_1 = arith.constant 0 : i32
    return %c0_i32, %c0_i32_0 : i32, i32
  }
  func.func @transform_1(%arg0: i32, %arg1: i32) -> (i32, i32) {
    %c0_i32 = arith.constant 0 : i32
    %c0_i32_0 = arith.constant 0 : i32
    %c0_i32_1 = arith.constant 0 : i32
    return %c0_i32, %c0_i32_0 : i32, i32
  }
  func.func @transform_2(%arg0: i32, %arg1: i32) -> (i32, i32, i32) {
    %c0_i32 = arith.constant 0 : i32
    %c0_i32_0 = arith.constant 0 : i32
    return %arg0, %c0_i32, %arg1 : i32, i32, i32
  }
  func.func @transform_3(%arg0: i32, %arg1: i32) -> (i32, i32, i32) {
    %c0_i32 = arith.constant 0 : i32
    %c0_i32_0 = arith.constant 0 : i32
    return %arg0, %c0_i32, %arg1 : i32, i32, i32
  }
}

module attributes {stable_mosaic.version = 11 : i64} {
  func.func @_tapmax_kernel(%arg0: i32, %arg1: i32, %arg2: memref<1x7x4x1024xbf16, #tpu.memory_space<vmem>>, %arg3: memref<1x4x1024xbf16, #tpu.memory_space<vmem>>) attributes {dimension_semantics = [#tpu.dimension_semantics<parallel>, #tpu.dimension_semantics<parallel>], iteration_bounds = array<i64: 2, 1>, scalar_prefetch = 0 : i64, scratch_operands = 0 : i64, tpu.core_type = #tpu.core_type<tc>, window_params = [{transform_indices = @transform_0, window_bounds = array<i64: 1, 7, 4, 1024>}, {transform_indices = @transform_1, window_bounds = array<i64: 1, 4, 1024>}]} {
    %c0 = arith.constant 0 : index
    %c0_0 = arith.constant 0 : index
    %c0_1 = arith.constant 0 : index
    %c0_2 = arith.constant 0 : index
    %0 = vector.load %arg2[%c0, %c0_0, %c0_1, %c0_2] : memref<1x7x4x1024xbf16, #tpu.memory_space<vmem>>, vector<1x7x4x1024xbf16>
    %1 = vector.shape_cast %0 : vector<1x7x4x1024xbf16> to vector<7x4x1024xbf16>
    %cst = arith.constant dense<0xFF80> : vector<4x1024xbf16>
    %2 = vector.multi_reduction <maximumf>, %1, %cst [0] : vector<7x4x1024xbf16> to vector<4x1024xbf16>
    %c0_3 = arith.constant 0 : index
    %c0_4 = arith.constant 0 : index
    %c0_5 = arith.constant 0 : index
    %3 = vector.load %arg3[%c0_3, %c0_4, %c0_5] : memref<1x4x1024xbf16, #tpu.memory_space<vmem>>, vector<1x4x1024xbf16>
    %4 = vector.shape_cast %3 : vector<1x4x1024xbf16> to vector<4x1024xbf16>
    %5 = vector.shape_cast %2 : vector<4x1024xbf16> to vector<1x4x1024xbf16>
    tpu.vector_store %arg3[%c0_3, %c0_4, %c0_5], %5 {strides = array<i32>} : memref<1x4x1024xbf16, #tpu.memory_space<vmem>>, vector<1x4x1024xbf16>,
    return
  }
  func.func @transform_0(%arg0: i32, %arg1: i32) -> (i32, i32, i32, i32) {
    %c0_i32 = arith.constant 0 : i32
    %c0_i32_0 = arith.constant 0 : i32
    %c0_i32_1 = arith.constant 0 : i32
    return %arg0, %c0_i32, %c0_i32_0, %arg1 : i32, i32, i32, i32
  }
  func.func @transform_1(%arg0: i32, %arg1: i32) -> (i32, i32, i32) {
    %c0_i32 = arith.constant 0 : i32
    %c0_i32_0 = arith.constant 0 : i32
    return %arg0, %c0_i32, %arg1 : i32, i32, i32
  }
}

module attributes {stable_mosaic.version = 11 : i64} {
  func.func @_tapmax_kernel(%arg0: i32, %arg1: i32, %arg2: memref<1x7x4x1024xbf16, #tpu.memory_space<vmem>>, %arg3: memref<1x4x1024xbf16, #tpu.memory_space<vmem>>) attributes {dimension_semantics = [#tpu.dimension_semantics<parallel>, #tpu.dimension_semantics<parallel>], iteration_bounds = array<i64: 2, 1>, scalar_prefetch = 0 : i64, scratch_operands = 0 : i64, tpu.core_type = #tpu.core_type<tc>, window_params = [{transform_indices = @transform_0, window_bounds = array<i64: 1, 7, 4, 1024>}, {transform_indices = @transform_1, window_bounds = array<i64: 1, 4, 1024>}]} {
    %c0 = arith.constant 0 : index
    %c0_0 = arith.constant 0 : index
    %c0_1 = arith.constant 0 : index
    %c0_2 = arith.constant 0 : index
    %0 = vector.load %arg2[%c0, %c0_0, %c0_1, %c0_2] : memref<1x7x4x1024xbf16, #tpu.memory_space<vmem>>, vector<1x7x4x1024xbf16>
    %1 = vector.shape_cast %0 : vector<1x7x4x1024xbf16> to vector<7x4x1024xbf16>
    %cst = arith.constant dense<0xFF80> : vector<4x1024xbf16>
    %2 = vector.multi_reduction <maximumf>, %1, %cst [0] : vector<7x4x1024xbf16> to vector<4x1024xbf16>
    %c0_3 = arith.constant 0 : index
    %c0_4 = arith.constant 0 : index
    %c0_5 = arith.constant 0 : index
    %3 = vector.load %arg3[%c0_3, %c0_4, %c0_5] : memref<1x4x1024xbf16, #tpu.memory_space<vmem>>, vector<1x4x1024xbf16>
    %4 = vector.shape_cast %3 : vector<1x4x1024xbf16> to vector<4x1024xbf16>
    %5 = vector.shape_cast %2 : vector<4x1024xbf16> to vector<1x4x1024xbf16>
    tpu.vector_store %arg3[%c0_3, %c0_4, %c0_5], %5 {strides = array<i32>} : memref<1x4x1024xbf16, #tpu.memory_space<vmem>>, vector<1x4x1024xbf16>,
    return
  }
  func.func @transform_0(%arg0: i32, %arg1: i32) -> (i32, i32, i32, i32) {
    %c0_i32 = arith.constant 0 : i32
    %c0_i32_0 = arith.constant 0 : i32
    %c0_i32_1 = arith.constant 0 : i32
    return %arg0, %c0_i32, %c0_i32_0, %arg1 : i32, i32, i32, i32
  }
  func.func @transform_1(%arg0: i32, %arg1: i32) -> (i32, i32, i32) {
    %c0_i32 = arith.constant 0 : i32
    %c0_i32_0 = arith.constant 0 : i32
    return %arg0, %c0_i32, %arg1 : i32, i32, i32
  }
}

module attributes {stable_mosaic.version = 11 : i64} {
  func.func @_wxb_kernel(%arg0: i32, %arg1: i32, %arg2: memref<4x36xbf16, #tpu.memory_space<vmem>>, %arg3: memref<4x1xf32, #tpu.memory_space<vmem>>, %arg4: memref<1x36x1024xbf16, #tpu.memory_space<vmem>>, %arg5: memref<1x4x1024xbf16, #tpu.memory_space<vmem>>) attributes {dimension_semantics = [#tpu.dimension_semantics<parallel>, #tpu.dimension_semantics<parallel>], iteration_bounds = array<i64: 2, 1>, scalar_prefetch = 0 : i64, scratch_operands = 0 : i64, tpu.core_type = #tpu.core_type<tc>, window_params = [{pipeline_mode = #tpu.pipeline_mode<synchronous>, transform_indices = @transform_0, window_bounds = array<i64: 4, 36>}, {pipeline_mode = #tpu.pipeline_mode<synchronous>, transform_indices = @transform_1, window_bounds = array<i64: 4, 1>}, {transform_indices = @transform_2, window_bounds = array<i64: 1, 36, 1024>}, {transform_indices = @transform_3, window_bounds = array<i64: 1, 4, 1024>}]} {
    %c0 = arith.constant 0 : index
    %c0_0 = arith.constant 0 : index
    %0 = vector.load %arg2[%c0, %c0_0] : memref<4x36xbf16, #tpu.memory_space<vmem>>, vector<4x36xbf16>
    %c0_1 = arith.constant 0 : index
    %c0_2 = arith.constant 0 : index
    %c0_3 = arith.constant 0 : index
    %1 = vector.load %arg4[%c0_1, %c0_2, %c0_3] : memref<1x36x1024xbf16, #tpu.memory_space<vmem>>, vector<1x36x1024xbf16>
    %2 = vector.shape_cast %1 : vector<1x36x1024xbf16> to vector<36x1024xbf16>
    %cst = arith.constant dense<0.000000e+00> : vector<4x1024xf32>
    %3 = tpu.matmul %0, %2, %cst {dimension_numbers = #tpu.dot_dimension_numbers<[1], [0], [0], [1], [0, 0, 1, 1], [], []>} : vector<4x36xbf16>, vector<36x1024xbf16>, vector<4x1024xf32> -> vector<4x1024xf32>
    %c0_4 = arith.constant 0 : index
    %c0_5 = arith.constant 0 : index
    %4 = vector.load %arg3[%c0_4, %c0_5] : memref<4x1xf32, #tpu.memory_space<vmem>>, vector<4x1xf32>
    %5 = vector.broadcast %4 : vector<4x1xf32> to vector<4x1024xf32>
    %6 = arith.addf %3, %5 : vector<4x1024xf32>
    %cst_6 = arith.constant 0.000000e+00 : f32
    %7 = vector.broadcast %cst_6 : f32 to vector<4x1024xf32>
    %8 = arith.maximumf %6, %7 : vector<4x1024xf32>
    %9 = arith.truncf %8 : vector<4x1024xf32> to vector<4x1024xbf16>
    %c0_7 = arith.constant 0 : index
    %c0_8 = arith.constant 0 : index
    %c0_9 = arith.constant 0 : index
    %10 = vector.load %arg5[%c0_7, %c0_8, %c0_9] : memref<1x4x1024xbf16, #tpu.memory_space<vmem>>, vector<1x4x1024xbf16>
    %11 = vector.shape_cast %10 : vector<1x4x1024xbf16> to vector<4x1024xbf16>
    %12 = vector.shape_cast %9 : vector<4x1024xbf16> to vector<1x4x1024xbf16>
    tpu.vector_store %arg5[%c0_7, %c0_8, %c0_9], %12 {strides = array<i32>} : memref<1x4x1024xbf16, #tpu.memory_space<vmem>>, vector<1x4x1024xbf16>,
    return
  }
  func.func @transform_0(%arg0: i32, %arg1: i32) -> (i32, i32) {
    %c0_i32 = arith.constant 0 : i32
    %c0_i32_0 = arith.constant 0 : i32
    %c0_i32_1 = arith.constant 0 : i32
    return %c0_i32, %c0_i32_0 : i32, i32
  }
  func.func @transform_1(%arg0: i32, %arg1: i32) -> (i32, i32) {
    %c0_i32 = arith.constant 0 : i32
    %c0_i32_0 = arith.constant 0 : i32
    %c0_i32_1 = arith.constant 0 : i32
    return %c0_i32, %c0_i32_0 : i32, i32
  }
  func.func @transform_2(%arg0: i32, %arg1: i32) -> (i32, i32, i32) {
    %c0_i32 = arith.constant 0 : i32
    %c0_i32_0 = arith.constant 0 : i32
    return %arg0, %c0_i32, %arg1 : i32, i32, i32
  }
  func.func @transform_3(%arg0: i32, %arg1: i32) -> (i32, i32, i32) {
    %c0_i32 = arith.constant 0 : i32
    %c0_i32_0 = arith.constant 0 : i32
    return %arg0, %c0_i32, %arg1 : i32, i32, i32
  }
}

module attributes {stable_mosaic.version = 11 : i64} {
  func.func @_wxb_kernel(%arg0: i32, %arg1: i32, %arg2: memref<4x36xbf16, #tpu.memory_space<vmem>>, %arg3: memref<4x1xf32, #tpu.memory_space<vmem>>, %arg4: memref<1x36x1024xbf16, #tpu.memory_space<vmem>>, %arg5: memref<1x4x1024xbf16, #tpu.memory_space<vmem>>) attributes {dimension_semantics = [#tpu.dimension_semantics<parallel>, #tpu.dimension_semantics<parallel>], iteration_bounds = array<i64: 2, 1>, scalar_prefetch = 0 : i64, scratch_operands = 0 : i64, tpu.core_type = #tpu.core_type<tc>, window_params = [{pipeline_mode = #tpu.pipeline_mode<synchronous>, transform_indices = @transform_0, window_bounds = array<i64: 4, 36>}, {pipeline_mode = #tpu.pipeline_mode<synchronous>, transform_indices = @transform_1, window_bounds = array<i64: 4, 1>}, {transform_indices = @transform_2, window_bounds = array<i64: 1, 36, 1024>}, {transform_indices = @transform_3, window_bounds = array<i64: 1, 4, 1024>}]} {
    %c0 = arith.constant 0 : index
    %c0_0 = arith.constant 0 : index
    %0 = vector.load %arg2[%c0, %c0_0] : memref<4x36xbf16, #tpu.memory_space<vmem>>, vector<4x36xbf16>
    %c0_1 = arith.constant 0 : index
    %c0_2 = arith.constant 0 : index
    %c0_3 = arith.constant 0 : index
    %1 = vector.load %arg4[%c0_1, %c0_2, %c0_3] : memref<1x36x1024xbf16, #tpu.memory_space<vmem>>, vector<1x36x1024xbf16>
    %2 = vector.shape_cast %1 : vector<1x36x1024xbf16> to vector<36x1024xbf16>
    %cst = arith.constant dense<0.000000e+00> : vector<4x1024xf32>
    %3 = tpu.matmul %0, %2, %cst {dimension_numbers = #tpu.dot_dimension_numbers<[1], [0], [0], [1], [0, 0, 1, 1], [], []>} : vector<4x36xbf16>, vector<36x1024xbf16>, vector<4x1024xf32> -> vector<4x1024xf32>
    %c0_4 = arith.constant 0 : index
    %c0_5 = arith.constant 0 : index
    %4 = vector.load %arg3[%c0_4, %c0_5] : memref<4x1xf32, #tpu.memory_space<vmem>>, vector<4x1xf32>
    %5 = vector.broadcast %4 : vector<4x1xf32> to vector<4x1024xf32>
    %6 = arith.addf %3, %5 : vector<4x1024xf32>
    %7 = arith.truncf %6 : vector<4x1024xf32> to vector<4x1024xbf16>
    %c0_6 = arith.constant 0 : index
    %c0_7 = arith.constant 0 : index
    %c0_8 = arith.constant 0 : index
    %8 = vector.load %arg5[%c0_6, %c0_7, %c0_8] : memref<1x4x1024xbf16, #tpu.memory_space<vmem>>, vector<1x4x1024xbf16>
    %9 = vector.shape_cast %8 : vector<1x4x1024xbf16> to vector<4x1024xbf16>
    %10 = vector.shape_cast %7 : vector<4x1024xbf16> to vector<1x4x1024xbf16>
    tpu.vector_store %arg5[%c0_6, %c0_7, %c0_8], %10 {strides = array<i32>} : memref<1x4x1024xbf16, #tpu.memory_space<vmem>>, vector<1x4x1024xbf16>,
    return
  }
  func.func @transform_0(%arg0: i32, %arg1: i32) -> (i32, i32) {
    %c0_i32 = arith.constant 0 : i32
    %c0_i32_0 = arith.constant 0 : i32
    %c0_i32_1 = arith.constant 0 : i32
    return %c0_i32, %c0_i32_0 : i32, i32
  }
  func.func @transform_1(%arg0: i32, %arg1: i32) -> (i32, i32) {
    %c0_i32 = arith.constant 0 : i32
    %c0_i32_0 = arith.constant 0 : i32
    %c0_i32_1 = arith.constant 0 : i32
    return %c0_i32, %c0_i32_0 : i32, i32
  }
  func.func @transform_2(%arg0: i32, %arg1: i32) -> (i32, i32, i32) {
    %c0_i32 = arith.constant 0 : i32
    %c0_i32_0 = arith.constant 0 : i32
    return %arg0, %c0_i32, %arg1 : i32, i32, i32
  }
  func.func @transform_3(%arg0: i32, %arg1: i32) -> (i32, i32, i32) {
    %c0_i32 = arith.constant 0 : i32
    %c0_i32_0 = arith.constant 0 : i32
    return %arg0, %c0_i32, %arg1 : i32, i32, i32
  }
}

module attributes {stable_mosaic.version = 11 : i64} {
  func.func @_bilinear_kernel(%arg0: i32, %arg1: memref<1x4x3x3xbf16, #tpu.memory_space<vmem>>, %arg2: memref<32x3xf32, #tpu.memory_space<vmem>>, %arg3: memref<32x3xf32, #tpu.memory_space<vmem>>, %arg4: memref<1x4x32x32xbf16, #tpu.memory_space<vmem>>) attributes {dimension_semantics = [#tpu.dimension_semantics<parallel>], iteration_bounds = array<i64: 2>, scalar_prefetch = 0 : i64, scratch_operands = 0 : i64, tpu.core_type = #tpu.core_type<tc>, window_params = [{transform_indices = @transform_0, window_bounds = array<i64: 1, 4, 3, 3>}, {pipeline_mode = #tpu.pipeline_mode<synchronous>, transform_indices = @transform_1, window_bounds = array<i64: 32, 3>}, {pipeline_mode = #tpu.pipeline_mode<synchronous>, transform_indices = @transform_2, window_bounds = array<i64: 32, 3>}, {transform_indices = @transform_3, window_bounds = array<i64: 1, 4, 32, 32>}]} {
    %c0 = arith.constant 0 : index
    %c0_0 = arith.constant 0 : index
    %c0_1 = arith.constant 0 : index
    %c0_2 = arith.constant 0 : index
    %0 = vector.load %arg1[%c0, %c0_0, %c0_1, %c0_2] : memref<1x4x3x3xbf16, #tpu.memory_space<vmem>>, vector<1x4x3x3xbf16>
    %1 = vector.shape_cast %0 : vector<1x4x3x3xbf16> to vector<4x3x3xbf16>
    %2 = arith.extf %1 : vector<4x3x3xbf16> to vector<4x3x3xf32>
    %c0_3 = arith.constant 0 : index
    %c0_4 = arith.constant 0 : index
    %3 = vector.load %arg2[%c0_3, %c0_4] : memref<32x3xf32, #tpu.memory_space<vmem>>, vector<32x3xf32>
    %c0_5 = arith.constant 0 : index
    %c0_6 = arith.constant 0 : index
    %4 = vector.load %arg3[%c0_5, %c0_6] : memref<32x3xf32, #tpu.memory_space<vmem>>, vector<32x3xf32>
    %5 = vector.shape_cast %3 : vector<32x3xf32> to vector<1x32x3xf32>
    %6 = vector.shape_cast %5 : vector<1x32x3xf32> to vector<1x32x3xf32>
    %7 = vector.broadcast %6 : vector<1x32x3xf32> to vector<4x32x3xf32>
    %8 = vector.shape_cast %4 : vector<32x3xf32> to vector<1x32x3xf32>
    %9 = vector.shape_cast %8 : vector<1x32x3xf32> to vector<1x32x3xf32>
    %10 = vector.broadcast %9 : vector<1x32x3xf32> to vector<4x32x3xf32>
    "tpu.trace_start"() <{level = 10 : i32, message = "chw,cpw->chp"}> : () -> ()
    %cst = arith.constant dense<0.000000e+00> : vector<4x3x32xf32>
    %11 = tpu.matmul %2, %10, %cst {dimension_numbers = #tpu.dot_dimension_numbers<[2], [2], [1], [1], [0, 0, 0, 1, 1, 1], [0], [0]>} : vector<4x3x3xf32>, vector<4x32x3xf32>, vector<4x3x32xf32> -> vector<4x3x32xf32>
    "tpu.trace_stop"() : () -> ()
    "tpu.trace_start"() <{level = 10 : i32, message = "coh,chp->cop"}> : () -> ()
    %cst_7 = arith.constant dense<0.000000e+00> : vector<4x32x32xf32>
    %12 = tpu.matmul %7, %11, %cst_7 {dimension_numbers = #tpu.dot_dimension_numbers<[2], [1], [1], [2], [0, 0, 0, 1, 1, 2], [0], [0]>} : vector<4x32x3xf32>, vector<4x3x32xf32>, vector<4x32x32xf32> -> vector<4x32x32xf32>
    "tpu.trace_stop"() : () -> ()
    %13 = arith.truncf %12 : vector<4x32x32xf32> to vector<4x32x32xbf16>
    %c0_8 = arith.constant 0 : index
    %c0_9 = arith.constant 0 : index
    %c0_10 = arith.constant 0 : index
    %c0_11 = arith.constant 0 : index
    %14 = vector.load %arg4[%c0_8, %c0_9, %c0_10, %c0_11] : memref<1x4x32x32xbf16, #tpu.memory_space<vmem>>, vector<1x4x32x32xbf16>
    %15 = vector.shape_cast %14 : vector<1x4x32x32xbf16> to vector<4x32x32xbf16>
    %16 = vector.shape_cast %13 : vector<4x32x32xbf16> to vector<1x4x32x32xbf16>
    tpu.vector_store %arg4[%c0_8, %c0_9, %c0_10, %c0_11], %16 {strides = array<i32>} : memref<1x4x32x32xbf16, #tpu.memory_space<vmem>>, vector<1x4x32x32xbf16>,
    return
  }
  func.func @transform_0(%arg0: i32) -> (i32, i32, i32, i32) {
    %c0_i32 = arith.constant 0 : i32
    %c0_i32_0 = arith.constant 0 : i32
    %c0_i32_1 = arith.constant 0 : i32
    %c0_i32_2 = arith.constant 0 : i32
    return %arg0, %c0_i32, %c0_i32_0, %c0_i32_1 : i32, i32, i32, i32
  }
  func.func @transform_1(%arg0: i32) -> (i32, i32) {
    %c0_i32 = arith.constant 0 : i32
    %c0_i32_0 = arith.constant 0 : i32
    %c0_i32_1 = arith.constant 0 : i32
    return %c0_i32, %c0_i32_0 : i32, i32
  }
  func.func @transform_2(%arg0: i32) -> (i32, i32) {
    %c0_i32 = arith.constant 0 : i32
    %c0_i32_0 = arith.constant 0 : i32
    %c0_i32_1 = arith.constant 0 : i32
    return %c0_i32, %c0_i32_0 : i32, i32
  }
  func.func @transform_3(%arg0: i32) -> (i32, i32, i32, i32) {
    %c0_i32 = arith.constant 0 : i32
    %c0_i32_0 = arith.constant 0 : i32
    %c0_i32_1 = arith.constant 0 : i32
    %c0_i32_2 = arith.constant 0 : i32
    return %arg0, %c0_i32, %c0_i32_0, %c0_i32_1 : i32, i32, i32, i32
  }
}

module attributes {stable_mosaic.version = 11 : i64} {
  func.func @_wxb_kernel(%arg0: i32, %arg1: i32, %arg2: memref<4x4xbf16, #tpu.memory_space<vmem>>, %arg3: memref<4x1xf32, #tpu.memory_space<vmem>>, %arg4: memref<1x4x1024xbf16, #tpu.memory_space<vmem>>, %arg5: memref<1x4x1024xbf16, #tpu.memory_space<vmem>>) attributes {dimension_semantics = [#tpu.dimension_semantics<parallel>, #tpu.dimension_semantics<parallel>], iteration_bounds = array<i64: 2, 1>, scalar_prefetch = 0 : i64, scratch_operands = 0 : i64, tpu.core_type = #tpu.core_type<tc>, window_params = [{pipeline_mode = #tpu.pipeline_mode<synchronous>, transform_indices = @transform_0, window_bounds = array<i64: 4, 4>}, {pipeline_mode = #tpu.pipeline_mode<synchronous>, transform_indices = @transform_1, window_bounds = array<i64: 4, 1>}, {transform_indices = @transform_2, window_bounds = array<i64: 1, 4, 1024>}, {transform_indices = @transform_3, window_bounds = array<i64: 1, 4, 1024>}]} {
    %c0 = arith.constant 0 : index
    %c0_0 = arith.constant 0 : index
    %0 = vector.load %arg2[%c0, %c0_0] : memref<4x4xbf16, #tpu.memory_space<vmem>>, vector<4x4xbf16>
    %c0_1 = arith.constant 0 : index
    %c0_2 = arith.constant 0 : index
    %c0_3 = arith.constant 0 : index
    %1 = vector.load %arg4[%c0_1, %c0_2, %c0_3] : memref<1x4x1024xbf16, #tpu.memory_space<vmem>>, vector<1x4x1024xbf16>
    %2 = vector.shape_cast %1 : vector<1x4x1024xbf16> to vector<4x1024xbf16>
    %cst = arith.constant dense<0.000000e+00> : vector<4x1024xf32>
    %3 = tpu.matmul %0, %2, %cst {dimension_numbers = #tpu.dot_dimension_numbers<[1], [0], [0], [1], [0, 0, 1, 1], [], []>} : vector<4x4xbf16>, vector<4x1024xbf16>, vector<4x1024xf32> -> vector<4x1024xf32>
    %c0_4 = arith.constant 0 : index
    %c0_5 = arith.constant 0 : index
    %4 = vector.load %arg3[%c0_4, %c0_5] : memref<4x1xf32, #tpu.memory_space<vmem>>, vector<4x1xf32>
    %5 = vector.broadcast %4 : vector<4x1xf32> to vector<4x1024xf32>
    %6 = arith.addf %3, %5 : vector<4x1024xf32>
    %7 = arith.truncf %6 : vector<4x1024xf32> to vector<4x1024xbf16>
    %c0_6 = arith.constant 0 : index
    %c0_7 = arith.constant 0 : index
    %c0_8 = arith.constant 0 : index
    %8 = vector.load %arg5[%c0_6, %c0_7, %c0_8] : memref<1x4x1024xbf16, #tpu.memory_space<vmem>>, vector<1x4x1024xbf16>
    %9 = vector.shape_cast %8 : vector<1x4x1024xbf16> to vector<4x1024xbf16>
    %10 = vector.shape_cast %7 : vector<4x1024xbf16> to vector<1x4x1024xbf16>
    tpu.vector_store %arg5[%c0_6, %c0_7, %c0_8], %10 {strides = array<i32>} : memref<1x4x1024xbf16, #tpu.memory_space<vmem>>, vector<1x4x1024xbf16>,
    return
  }
  func.func @transform_0(%arg0: i32, %arg1: i32) -> (i32, i32) {
    %c0_i32 = arith.constant 0 : i32
    %c0_i32_0 = arith.constant 0 : i32
    %c0_i32_1 = arith.constant 0 : i32
    return %c0_i32, %c0_i32_0 : i32, i32
  }
  func.func @transform_1(%arg0: i32, %arg1: i32) -> (i32, i32) {
    %c0_i32 = arith.constant 0 : i32
    %c0_i32_0 = arith.constant 0 : i32
    %c0_i32_1 = arith.constant 0 : i32
    return %c0_i32, %c0_i32_0 : i32, i32
  }
  func.func @transform_2(%arg0: i32, %arg1: i32) -> (i32, i32, i32) {
    %c0_i32 = arith.constant 0 : i32
    %c0_i32_0 = arith.constant 0 : i32
    return %arg0, %c0_i32, %arg1 : i32, i32, i32
  }
  func.func @transform_3(%arg0: i32, %arg1: i32) -> (i32, i32, i32) {
    %c0_i32 = arith.constant 0 : i32
    %c0_i32_0 = arith.constant 0 : i32
    return %arg0, %c0_i32, %arg1 : i32, i32, i32
  }
}

module attributes {stable_mosaic.version = 11 : i64} {
  func.func @_tail_kernel(%arg0: i32, %arg1: i32, %arg2: memref<16x4xbf16, #tpu.memory_space<vmem>>, %arg3: memref<16x1xf32, #tpu.memory_space<vmem>>, %arg4: memref<1x4x1024xbf16, #tpu.memory_space<vmem>>, %arg5: memref<1x4x1024xbf16, #tpu.memory_space<vmem>>, %arg6: memref<1x16x1024xf32, #tpu.memory_space<vmem>>, %arg7: memref<1x16x1024xf32, #tpu.memory_space<vmem>>) attributes {dimension_semantics = [#tpu.dimension_semantics<parallel>, #tpu.dimension_semantics<parallel>], iteration_bounds = array<i64: 2, 1>, scalar_prefetch = 0 : i64, scratch_operands = 0 : i64, tpu.core_type = #tpu.core_type<tc>, window_params = [{pipeline_mode = #tpu.pipeline_mode<synchronous>, transform_indices = @transform_0, window_bounds = array<i64: 16, 4>}, {pipeline_mode = #tpu.pipeline_mode<synchronous>, transform_indices = @transform_1, window_bounds = array<i64: 16, 1>}, {transform_indices = @transform_2, window_bounds = array<i64: 1, 4, 1024>}, {transform_indices = @transform_3, window_bounds = array<i64: 1, 4, 1024>}, {transform_indices = @transform_4, window_bounds = array<i64: 1, 16, 1024>}, {transform_indices = @transform_5, window_bounds = array<i64: 1, 16, 1024>}]} {
    %c0 = arith.constant 0 : index
    %c0_0 = arith.constant 0 : index
    %0 = vector.load %arg2[%c0, %c0_0] : memref<16x4xbf16, #tpu.memory_space<vmem>>, vector<16x4xbf16>
    %c0_1 = arith.constant 0 : index
    %c0_2 = arith.constant 0 : index
    %c0_3 = arith.constant 0 : index
    %1 = vector.load %arg4[%c0_1, %c0_2, %c0_3] : memref<1x4x1024xbf16, #tpu.memory_space<vmem>>, vector<1x4x1024xbf16>
    %2 = vector.shape_cast %1 : vector<1x4x1024xbf16> to vector<4x1024xbf16>
    %cst = arith.constant dense<0.000000e+00> : vector<16x1024xf32>
    %3 = tpu.matmul %0, %2, %cst {dimension_numbers = #tpu.dot_dimension_numbers<[1], [0], [0], [1], [0, 0, 1, 1], [], []>} : vector<16x4xbf16>, vector<4x1024xbf16>, vector<16x1024xf32> -> vector<16x1024xf32>
    %c0_4 = arith.constant 0 : index
    %c0_5 = arith.constant 0 : index
    %c0_6 = arith.constant 0 : index
    %4 = vector.load %arg5[%c0_4, %c0_5, %c0_6] : memref<1x4x1024xbf16, #tpu.memory_space<vmem>>, vector<1x4x1024xbf16>
    %5 = vector.shape_cast %4 : vector<1x4x1024xbf16> to vector<4x1024xbf16>
    %cst_7 = arith.constant dense<0.000000e+00> : vector<16x1024xf32>
    %6 = tpu.matmul %0, %5, %cst_7 {dimension_numbers = #tpu.dot_dimension_numbers<[1], [0], [0], [1], [0, 0, 1, 1], [], []>} : vector<16x4xbf16>, vector<4x1024xbf16>, vector<16x1024xf32> -> vector<16x1024xf32>
    %7 = arith.addf %3, %6 : vector<16x1024xf32>
    %c0_8 = arith.constant 0 : index
    %c0_9 = arith.constant 0 : index
    %8 = vector.load %arg3[%c0_8, %c0_9] : memref<16x1xf32, #tpu.memory_space<vmem>>, vector<16x1xf32>
    %9 = vector.broadcast %8 : vector<16x1xf32> to vector<16x1024xf32>
    %10 = arith.addf %7, %9 : vector<16x1024xf32>
    %11 = arith.negf %10 : vector<16x1024xf32>
    %12 = math.exp %11 : vector<16x1024xf32>
    %cst_10 = arith.constant 1.000000e+00 : f32
    %13 = vector.broadcast %cst_10 : f32 to vector<16x1024xf32>
    %14 = arith.addf %13, %12 : vector<16x1024xf32>
    %15 = arith.divf %13, %14 : vector<16x1024xf32>
    %c0_11 = arith.constant 0 : index
    %c0_12 = arith.constant 0 : index
    %c0_13 = arith.constant 0 : index
    %16 = vector.load %arg6[%c0_11, %c0_12, %c0_13] : memref<1x16x1024xf32, #tpu.memory_space<vmem>>, vector<1x16x1024xf32>
    %17 = vector.shape_cast %16 : vector<1x16x1024xf32> to vector<16x1024xf32>
    %18 = arith.mulf %17, %15 : vector<16x1024xf32>
    %c0_14 = arith.constant 0 : index
    %c0_15 = arith.constant 0 : index
    %c0_16 = arith.constant 0 : index
    %19 = vector.load %arg7[%c0_14, %c0_15, %c0_16] : memref<1x16x1024xf32, #tpu.memory_space<vmem>>, vector<1x16x1024xf32>
    %20 = vector.shape_cast %19 : vector<1x16x1024xf32> to vector<16x1024xf32>
    %21 = vector.shape_cast %18 : vector<16x1024xf32> to vector<1x16x1024xf32>
    tpu.vector_store %arg7[%c0_14, %c0_15, %c0_16], %21 {strides = array<i32>} : memref<1x16x1024xf32, #tpu.memory_space<vmem>>, vector<1x16x1024xf32>,
    return
  }
  func.func @transform_0(%arg0: i32, %arg1: i32) -> (i32, i32) {
    %c0_i32 = arith.constant 0 : i32
    %c0_i32_0 = arith.constant 0 : i32
    %c0_i32_1 = arith.constant 0 : i32
    return %c0_i32, %c0_i32_0 : i32, i32
  }
  func.func @transform_1(%arg0: i32, %arg1: i32) -> (i32, i32) {
    %c0_i32 = arith.constant 0 : i32
    %c0_i32_0 = arith.constant 0 : i32
    %c0_i32_1 = arith.constant 0 : i32
    return %c0_i32, %c0_i32_0 : i32, i32
  }
  func.func @transform_2(%arg0: i32, %arg1: i32) -> (i32, i32, i32) {
    %c0_i32 = arith.constant 0 : i32
    %c0_i32_0 = arith.constant 0 : i32
    return %arg0, %c0_i32, %arg1 : i32, i32, i32
  }
  func.func @transform_3(%arg0: i32, %arg1: i32) -> (i32, i32, i32) {
    %c0_i32 = arith.constant 0 : i32
    %c0_i32_0 = arith.constant 0 : i32
    return %arg0, %c0_i32, %arg1 : i32, i32, i32
  }
  func.func @transform_4(%arg0: i32, %arg1: i32) -> (i32, i32, i32) {
    %c0_i32 = arith.constant 0 : i32
    %c0_i32_0 = arith.constant 0 : i32
    return %arg0, %c0_i32, %arg1 : i32, i32, i32
  }
  func.func @transform_5(%arg0: i32, %arg1: i32) -> (i32, i32, i32) {
    %c0_i32 = arith.constant 0 : i32
    %c0_i32_0 = arith.constant 0 : i32
    return %arg0, %c0_i32, %arg1 : i32, i32, i32
  }
}

</mosaic_0001>

<bundles_post_ra>
// kernel: esa_forward.10
= control target key start
LH: loop header
LB: loop body
LE: loop exit
PB: predicated region body
PF: predicated region fallthrough
CT: control target
= control target key end

     0   :  { %s758_s12 = smov 0   ;;  %s760_s13 = smov 0   ;;  %s823_s0 = inlined_call_operand.vmem [shape: f32[4,16], index: 0, kind: input, shape index: {}]   ;;  %s824_s1 = inlined_call_operand.vmem [shape: f32[4,1], index: 1, kind: input, shape index: {}]   ;;  %s825_s2 = inlined_call_operand.vmem [shape: f32[2,16,1024], index: 2, kind: input, shape index: {}]   ;;  %s826_s3 = inlined_call_operand.vmem [shape: bf16[2,4,1024], index: 3, kind: output, shape index: {}]  }
   0x1   :  { %s762_s14 = smov 0  }
   0x2 LB: > { %s25_s15 = sadd.s32 1, %s729_s13  ;;  %p666_p0 = scmp.ge.s32.totalorder %s733_s14, 1  ;;  %s733_s14 = sphi %s762_s14, %s13_s14   ;;  %s729_s13 = sphi %s760_s13, %s828_s13   ;;  %s725_s12 = sphi %s758_s12, %s827_s12  }
   0x3   : > { %p27_p1 = scmp.ge.s32.totalorder %s25_s15, 2  ;;  %p158_p2 = scmp.lt.s32.totalorder %s733_s14, 3 }
   0x5   : > { %s830_s15 = smov (%p27_p1, %s25_s15), 0  ;;  %p159_p3 = pnand %p666_p0, %p158_p2 }
   0x6   : > { %p191_p4 = scmp.lt.s32.totalorder (!%p159_p3), %s725_s12, 1 }
   0x7   : > { %162 = sbr.rel (%p159_p3) target bundleno = 230 (0xe6), region = 32 }
   0xc   : > { %v735_v0 = vmov 0.0   ;;  %v227_v1 = vld [vmem:[%s824_s1] sm:$0xf]  ;;  %s832_s12 = smov (!%p191_p4, %s725_s12), 1  ;;  %v736_v2 = vmov 0   ;;  %vm233_vm0 = vcmask 130048   ;;  %v542_v22 = vlaneseq }
   0xd   : > { %301 = vmatprep.mubr.f32.mxu0 %v735_v0  ;;  %372 = vmatprep.mubr.f32.mxu1 %v735_v0  ;;  %s681_s18 = sshll.u32 %s832_s12, 7  ;;  %v210_v11 = vld [vmem:[%s823_s0] sm:$0xf]  ;;  %v737_v20 = vmov 1983009808   ;;  %s682_s24 = sshll.u32 %s832_s12, 4 }
   0xe   : > { %710 = vset.pattern.permute.xlu0 %v736_v2  ;;  %s785_s21 = scalar_lea.vmem %s825_s2, %s681_s18  ;;  %v540_v21 = vunpack.c.l.s4 %v737_v20  ;;  %v543_v24 = vshrl.u32 %v542_v22, 7  ;;  %s208_s27 = scalar_lea.vmem %s826_s3, %s682_s24 }
   0xf   : > { %230 = vperm.xlu0 %710, %v227_v1   ;;  %v220_v3 = vld [vmem:[%s785_s21 + $0x48] sm:$0xff]  ;;  %v222_v4 = vld [vmem:[%s785_s21 + $0x58] sm:$0xff]  ;;  %v219_v5 = vld [vmem:[%s785_s21 + $0x40] sm:$0xff] }
  0x10   : > { %265 = vmatprep.subr.mxu0 %v220_v3  ;;  %336 = vmatprep.subr.mxu1 %v222_v4  ;;  %v221_v6 = vld [vmem:[%s785_s21 + $0x50] sm:$0xff]  ;;  %v212_v7 = vld [vmem:[%s785_s21 + $0x8] sm:$0xff]  ;;  %v214_v8 = vld [vmem:[%s785_s21 + $0x18] sm:$0xff]  ;;  %v541_v23 = vunpack.c.0.s8 %v540_v21 }
  0x11   : > { %266 = vmatpush1.msra.mxu0 %v219_v5  ;;  %337 = vmatpush1.msra.mxu1 %v221_v6  ;;  %v211_v9 = vld [vmem:[%s785_s21] sm:$0xff]  ;;  %v213_v10 = vld [vmem:[%s785_s21 + $0x10] sm:$0xff]  ;;  %v224_v12 = vld [vmem:[%s785_s21 + $0x68] sm:$0xff] }
  0x12   : > { %267 = vmatprep.subr.mxu0 %v212_v7  ;;  %338 = vmatprep.subr.mxu1 %v214_v8  ;;  %v226_v13 = vld [vmem:[%s785_s21 + $0x78] sm:$0xff]  ;;  %v223_v14 = vld [vmem:[%s785_s21 + $0x60] sm:$0xff]  ;;  %v225_v15 = vld [vmem:[%s785_s21 + $0x70] sm:$0xff]  ;;  %v544_v29 = vsub.s32 %v541_v23, %v543_v24 }
  0x13   : > { %268 = vmatpush1.msra.mxu0 %v211_v9  ;;  %339 = vmatpush1.msra.mxu1 %v213_v10  ;;  %v216_v16 = vld [vmem:[%s785_s21 + $0x28] sm:$0xff]  ;;  %v218_v17 = vld [vmem:[%s785_s21 + $0x38] sm:$0xff]  ;;  %v215_v18 = vld [vmem:[%s785_s21 + $0x20] sm:$0xff] }
  0x14   : > { %671 = vmatmul.mubr.msk.f32.vlgmr.msra.gmra.mxu0 %vm233_vm0, %v210_v11  ;;  %672 = vmatmul.mubr.msk.f32.vlgmr.msra.gmra.mxu1 %vm233_vm0, %v210_v11  ;;  %v217_v19 = vld [vmem:[%s785_s21 + $0x30] sm:$0xff] }
  0x15   : > { %407 = vmatprep.subr.mxu0 %v224_v12  ;;  %478 = vmatprep.subr.mxu1 %v226_v13 }
  0x16   : > { %408 = vmatpush1.msra.mxu0 %v223_v14  ;;  %479 = vmatpush1.msra.mxu1 %v225_v15 }
  0x17   : > { %409 = vmatprep.subr.mxu0 %v216_v16  ;;  %480 = vmatprep.subr.mxu1 %v218_v17 }
  0x18   : > { %410 = vmatpush1.msra.mxu0 %v215_v18  ;;  %443 = vmatprep.mubr.f32.mxu0 %v735_v0 }
  0x19   : > { %481 = vmatpush1.msra.mxu1 %v217_v19  ;;  %514 = vmatprep.mubr.f32.mxu1 %v735_v0 }
  0x1a   : > { %673 = vmatmul.mubr.msk.f32.vlgmr.msra.gmra.mxu0 %vm233_vm0, %v210_v11  ;;  %674 = vmatmul.mubr.msk.f32.vlgmr.msra.gmra.mxu1 %vm233_vm0, %v210_v11 }
  0x8a   : > { %v231_v25 = vpop.permute.xlu0 %230 }
  0xd4   : > { %v303_v26 = vpop.f32.mrf.mxu0  ;;  %v374_v27 = vpop.f32.mrf.mxu1 }
  0xd5   : > { %v304_v31 = vadd.f32 %v303_v26, %v231_v25  ;;  %v375_v33 = vadd.f32 %v374_v27, %v231_v25 }
  0xd6   : > { %v305_v28 = vpop.f32.mrf.mxu0  ;;  %v376_v30 = vpop.f32.mrf.mxu1 }
  0xd7   : > { %v306_v32 = vadd.f32 %v305_v28, %v231_v25  ;;  %v377_v34 = vadd.f32 %v376_v30, %v231_v25 }
  0xd9   : > { %v675_v35 = vpack.c.bf16 %v306_v32, %v304_v31  ;;  %v676_v36 = vpack.c.bf16 %v377_v34, %v375_v33 }
  0xda   : > { %v445_v37 = vpop.f32.mrf.mxu0  ;;  %v516_v38 = vpop.f32.mrf.mxu1 }
  0xdb   : > { %v545_v39 = vrot.slane %v675_v35, %v544_v29  ;;  %v552_v40 = vrot.slane %v676_v36, %v544_v29  ;;  %v446_v41 = vadd.f32 %v445_v37, %v231_v25  ;;  %v517_v45 = vadd.f32 %v516_v38, %v231_v25 }
  0xdc   : > { %v447_v42 = vpop.f32.mrf.mxu0  ;;  %v518_v43 = vpop.f32.mrf.mxu1 }
  0xdd   : > { %v553_v44 = vcombine.low %v545_v39, %v552_v40  ;;  %v448_v46 = vadd.f32 %v447_v42, %v231_v25  ;;  %v519_v47 = vadd.f32 %v518_v43, %v231_v25 }
  0xdf   : > { %573 = vst [vmem:[%s208_s27] sm:$0xff] %v553_v44  ;;  %v677_v48 = vpack.c.bf16 %v448_v46, %v446_v41  ;;  %v678_v49 = vpack.c.bf16 %v519_v47, %v517_v45 }
  0xe1   : > { %v562_v50 = vrot.slane %v677_v48, %v544_v29  ;;  %v569_v51 = vrot.slane %v678_v49, %v544_v29 }
  0xe3   : > { %v570_v52 = vcombine.low %v562_v50, %v569_v51 }
  0xe5   : > { %574 = vst [vmem:[%s208_s27 + $0x8] sm:$0xff] %v570_v52 }
  0xe6 PF: > { %s13_s14 = sadd.s32 1, %s733_s14   ;;  %s827_s12 = smov %s729_s13 }
  0xe7   : > { %p10_p5 = scmp.ge.s32.totalorder %s13_s14, 4   ;;  %s828_s13 = smov %s830_s15 }
  0xe9   :  { %12 = sbr.rel (!%p10_p5) target bundleno = 2 (0x2), region = 62 }

// kernel: esa_forward.12
= control target key start
LH: loop header
LB: loop body
LE: loop exit
PB: predicated region body
PF: predicated region fallthrough
CT: control target
= control target key end

     0   :  { %s1960_s12 = smov 0   ;;  %s1962_s13 = smov 0   ;;  %s2081_s0 = inlined_call_operand.vmem [shape: bf16[4,36], index: 0, kind: input, shape index: {}]   ;;  %s2082_s1 = inlined_call_operand.vmem [shape: f32[4,1], index: 1, kind: input, shape index: {}]   ;;  %s2083_s2 = inlined_call_operand.vmem [shape: bf16[2,36,225], index: 2, kind: input, shape index: {}]   ;;  %s2084_s3 = inlined_call_operand.vmem [shape: bf16[2,4,225], index: 3, kind: output, shape index: {}]  }
   0x1   :  { %s1964_s14 = smov 0   ;;  %s1966_s15 = smov 0  }
   0x2   :  { %s1968_s16 = smov 0  }
   0x3 LB: > { %s25_s17 = sadd.s32 1, %s1928_s15  ;;  %s1722_s18 = sadd.s32 4294967295, %s1932_s16   ;;  %s1932_s16 = sphi %s1968_s16, %s13_s16   ;;  %s1928_s15 = sphi %s1966_s15, %s2089_s15   ;;  %s1924_s14 = sphi %s1964_s14, %s2088_s14   ;;  %s1920_s13 = sphi %s1962_s13, %s2087_s13   ;;  %s1916_s12 = sphi %s1960_s12, %s2086_s12  }
   0x4   : > { %p27_p0 = scmp.ge.s32.totalorder %s25_s17, 2  ;;  %p83_p1 = scmp.ne.s32.totalorder %s1920_s13, %s1916_s12 }
   0x5   : > { %p84_p2 = scmp.eq.s32.totalorder %s1932_s16, 0  ;;  %p115_p4 = scmp.eq.s32.totalorder %s1722_s18, 1 }
   0x6   : > { %s2091_s17 = smov (%p27_p0, %s25_s17), 0  ;;  %s76_s20 = sadd.s32 1, %s1920_s13 }
   0x7   : > { %p85_p3 = por %p84_p2, %p83_p1  ;;  %s71_s19 = ssub.s32 %s1928_s15, %s2091_s17 }
   0x8   : > { %p74_p5 = scmp.eq.s32.totalorder %s71_s19, 0  ;;  %p1995_p6 = por %p115_p4, %p83_p1 }
   0x9   : > { %p1725_p7 = scmp.ge.s32.totalorder %s1932_s16, 2 }
   0xa   : > { %s2000_s22 = scalar_select %p74_p5, %s1920_s13, %s76_s20  }
   0xb   : > { %143 = sbr.rel (%p1725_p7) target bundleno = 29 (0x1d), region = 24 }
  0x10   : > { %146 = sbr.rel (!%p85_p3) target bundleno = 29 (0x1d), region = 28  ;;  %s148_s23 = sand.u32 (%p85_p3), 1, %s1920_s13  }
  0x11   : > { %s1793_s24 = smul.u32 (%p85_p3), 40, %s1928_s15  ;;  %s1934_s30 = smov (%p85_p3), 0  }
  0x12   : > { %s1792_s25 = smul.u32 (%p85_p3), 160, %s148_s23 }
  0x13   : > { %s158_s28 = scalar_lea.vmem (%p85_p3), %s2083_s2, %s1793_s24  }
  0x14   : > { %s150_s29 = scalar_lea.vmem (%p85_p3), [#allocation2], %s1792_s25  }
  0x15 LB: >> { %v395_v0 = vld [vmem:[%s158_s28] sm:$0xff]  ;;  %v397_v1 = vld [vmem:[%s158_s28 + $0x8] sm:$0xff]  ;;  %v399_v2 = vld [vmem:[%s158_s28 + $0x10] sm:$0xff]  ;;  %s389_s30 = sadd.s32 1, %s1936_s30   ;;  %s1936_s30 = sphi %s1934_s30, %s389_s30  }
  0x16   : >> { %396 = vst [vmem:[%s150_s29] sm:$0xff] %v395_v0  ;;  %398 = vst [vmem:[%s150_s29 + $0x20] sm:$0xff] %v397_v1  ;;  %v401_v3 = vld [vmem:[%s158_s28 + $0x18] sm:$0xff]  ;;  %v403_v4 = vld [vmem:[%s158_s28 + $0x20] sm:$0xff]  ;;  %p388_p8 = scmp.ge.s32.totalorder %s389_s30, 1 }
  0x17   : >> { %400 = vst [vmem:[%s150_s29 + $0x40] sm:$0xff] %v399_v2  ;;  %402 = vst [vmem:[%s150_s29 + $0x60] sm:$0xff] %v401_v3 }
  0x18   : >> { %404 = vst [vmem:[%s150_s29 + $0x80] sm:$0xff] %v403_v4  ;;  %391 = sbr.rel (!%p388_p8) target bundleno = 21 (0x15), region = 246 }
  0x1d PF: > { %p1740_p9 = scmp.ge.s32.totalorder %s1932_s16, 1  ;;  %p659_p10 = scmp.lt.s32.totalorder %s1932_s16, 3 }
  0x1f   : > { %p660_p11 = pnand %p1740_p9, %p659_p10 }
  0x20   : > { %s666_s4 = sand.u32 (!%p660_p11), 1, %s1916_s12  }
  0x21   : > { %663 = sbr.rel (%p660_p11) target bundleno = 266 (0x10a), region = 94  ;;  %s1741_s11 = sshll.u32 (!%p660_p11), %s666_s4, 4 }
  0x22   : > { %s1794_s5 = smul.u32 (!%p660_p11), 160, %s666_s4  ;;  %s687_s18 = scalar_lea.vmem (!%p660_p11), [#allocation3], %s1741_s11 }
  0x24   : > { %s2019_s8 = scalar_lea.vmem (!%p660_p11), [#allocation2], %s1794_s5 }
  0x26   : > { %v1938_v5 = vmov 0   ;;  %v716_v6 = vld [vmem:[%s2082_s1] sm:$0xf]  ;;  %vm826_vm0 = vcmask 1041408   ;;  %v713_v8 = vld [vmem:[%s2019_s8 + $0x88] sm:$0x33]  ;;  %v1036_v58 = vlaneseq }
  0x27   : > { %883 = vmatprep.mubr.bf16.mxu0 %v1938_v5  ;;  %924 = vmatprep.mubr.bf16.mxu1 %v1938_v5  ;;  %v712_v7 = vld [vmem:[%s2019_s8 + $0x80] sm:$0x33]  ;;  %v1761_v11 = vcombine.high %v713_v8, %v713_v8  ;;  %v1760_v13 = vcombine.low %v713_v8, %v713_v8  ;;  %v705_v15 = vld [vmem:[%s2019_s8 + $0x48] sm:$0xff]  ;;  %v714_v29 = vld [vmem:[%s2019_s8 + $0x90] sm:$0x33]  ;;  %vm822_vm1 = vcmask 293888  }
  0x28   : > { %1869 = vset.pattern.permute.xlu0 %v1938_v5  ;;  %v704_v9 = vld [vmem:[%s2019_s8 + $0x40] sm:$0xff]  ;;  %v1759_v10 = vcombine.high %v712_v7, %v712_v7  ;;  %v1758_v12 = vcombine.low %v712_v7, %v712_v7  ;;  %v709_v16 = vld [vmem:[%s2019_s8 + $0x68] sm:$0xff]  ;;  %v715_v30 = vld [vmem:[%s2019_s8 + $0x98] sm:$0x33]  ;;  %v1763_v33 = vcombine.high %v714_v29, %v714_v29  ;;  %v1762_v35 = vcombine.low %v714_v29, %v714_v29  ;;  %s1791_s12 = sshll.u32 (%p1995_p6), %s1924_s14, 2 }
  0x29   : > { %719 = vperm.xlu0 %1869, %v716_v6   ;;  %v708_v14 = vld [vmem:[%s2019_s8 + $0x60] sm:$0xff]  ;;  %v1753_v18 = vcombine.high %v705_v15, %v709_v16  ;;  %v697_v21 = vld [vmem:[%s2019_s8 + $0x8] sm:$0xff]  ;;  %1768 = vmatprep.subr.msk.bf16.mxu1 %vm826_vm0, %v1761_v11  ;;  %v834_v23 = vsel %vm826_vm0, %v1760_v13, 0  ;;  %v1752_v26 = vcombine.low %v705_v15, %v709_v16  ;;  %v1765_v34 = vcombine.high %v715_v30, %v715_v30  ;;  %v706_v37 = vld [vmem:[%s2019_s8 + $0x50] sm:$0xff]  ;;  %s1083_s23 = scalar_lea.vmem (%p1995_p6), %s2084_s3, %s1791_s12 }
  0x2a   : > { %v1751_v17 = vcombine.high %v704_v9, %v708_v14  ;;  %v696_v19 = vld [vmem:[%s2019_s8] sm:$0xff]  ;;  %1766 = vmatprep.subr.msk.bf16.mxu0 %vm826_vm0, %v1759_v10  ;;  %v828_v22 = vsel %vm826_vm0, %v1758_v12, 0  ;;  %v701_v24 = vld [vmem:[%s2019_s8 + $0x28] sm:$0xff]  ;;  %903 = vmatpush1.bf16.msra.mxu1 %v834_v23  ;;  %v1750_v25 = vcombine.low %v704_v9, %v708_v14  ;;  %v1764_v36 = vcombine.low %v715_v30, %v715_v30  ;;  %v710_v38 = vld [vmem:[%s2019_s8 + $0x70] sm:$0xff] }
  0x2b   : > { %v700_v20 = vld [vmem:[%s2019_s8 + $0x20] sm:$0xff]  ;;  %862 = vmatpush1.bf16.msra.mxu0 %v828_v22  ;;  %904 = vmatprep.subr.bf16.mxu1 %v1753_v18  ;;  %v1745_v28 = vcombine.high %v697_v21, %v701_v24  ;;  %v1744_v32 = vcombine.low %v697_v21, %v701_v24  ;;  %v707_v39 = vld [vmem:[%s2019_s8 + $0x58] sm:$0xff]  ;;  %v840_v42 = vsel %vm826_vm0, %v1762_v35, 0  ;;  %v1755_v44 = vcombine.high %v706_v37, %v710_v38  ;;  %v698_v46 = vld [vmem:[%s2019_s8 + $0x10] sm:$0xff] }
  0x2c   : > { %863 = vmatprep.subr.bf16.mxu0 %v1751_v17  ;;  %v1743_v27 = vcombine.high %v696_v19, %v700_v20  ;;  %v1742_v31 = vcombine.low %v696_v19, %v700_v20  ;;  %v711_v40 = vld [vmem:[%s2019_s8 + $0x78] sm:$0xff]  ;;  %v695_v41 = vld [vmem:[%s2081_s0] sm:$0x3]  ;;  %v846_v43 = vsel %vm826_vm0, %v1764_v36, 0  ;;  %v702_v47 = vld [vmem:[%s2019_s8 + $0x30] sm:$0xff]  ;;  %v1754_v50 = vcombine.low %v706_v37, %v710_v38 }
  0x2d   : > { %v1757_v45 = vcombine.high %v707_v39, %v711_v40  ;;  %v699_v48 = vld [vmem:[%s2019_s8 + $0x18] sm:$0xff]  ;;  %v1756_v51 = vcombine.low %v707_v39, %v711_v40  ;;  %v1747_v52 = vcombine.high %v698_v46, %v702_v47  ;;  %v1746_v54 = vcombine.low %v698_v46, %v702_v47 }
  0x2e   : > { %905 = vmatpush1.bf16.msra.mxu1 %v1752_v26  ;;  %v703_v49 = vld [vmem:[%s2019_s8 + $0x38] sm:$0xff]  ;;  %v1939_v56 = vmov 1983009808   ;;  %v1037_v61 = vshrl.u32 %v1036_v58, 7 }
  0x2f   : > { %864 = vmatpush1.bf16.msra.mxu0 %v1750_v25  ;;  %906 = vmatprep.subr.bf16.mxu1 %v1745_v28  ;;  %v1749_v53 = vcombine.high %v699_v48, %v703_v49  ;;  %v1748_v55 = vcombine.low %v699_v48, %v703_v49  ;;  %v1034_v57 = vunpack.c.l.s4 %v1939_v56 }
  0x30   : > { %865 = vmatprep.subr.bf16.mxu0 %v1743_v27 }
  0x31   : > { %v1035_v60 = vunpack.c.0.s8 %v1034_v57 }
  0x32   : > { %907 = vmatpush1.bf16.msra.mxu1 %v1744_v32 }
  0x33   : > { %866 = vmatpush1.bf16.msra.mxu0 %v1742_v31  ;;  %1772 = vmatprep.subr.msk.bf16.mxu1 %vm826_vm0, %v1765_v34 }
  0x34   : > { %1770 = vmatprep.subr.msk.bf16.mxu0 %vm826_vm0, %v1763_v33 }
  0x35   : > { %1769 = vmatmul.mubr.msk.bf16.vlgmr.msra.gmra.mxu1 %vm822_vm1, %v695_v41 }
  0x36   : > { %1767 = vmatmul.mubr.msk.bf16.vlgmr.msra.gmra.mxu0 %vm822_vm1, %v695_v41  ;;  %985 = vmatpush1.bf16.msra.mxu1 %v846_v43 }
  0x37   : > { %944 = vmatpush1.bf16.msra.mxu0 %v840_v42  ;;  %986 = vmatprep.subr.bf16.mxu1 %v1757_v45 }
  0x38   : > { %945 = vmatprep.subr.bf16.mxu0 %v1755_v44  ;;  %965 = vmatprep.mubr.bf16.mxu0 %v1938_v5 }
  0x39   : > { %1006 = vmatprep.mubr.bf16.mxu1 %v1938_v5  ;;  %v1038_v5 = vsub.s32 %v1035_v60, %v1037_v61 }
  0x3a   : > { %987 = vmatpush1.bf16.msra.mxu1 %v1756_v51 }
  0x3b   : > { %946 = vmatpush1.bf16.msra.mxu0 %v1754_v50  ;;  %988 = vmatprep.subr.bf16.mxu1 %v1749_v53 }
  0x3c   : > { %947 = vmatprep.subr.bf16.mxu0 %v1747_v52 }
  0x3e   : > { %989 = vmatpush1.bf16.msra.mxu1 %v1748_v55 }
  0x3f   : > { %948 = vmatpush1.bf16.msra.mxu0 %v1746_v54 }
  0x41   : > { %1773 = vmatmul.mubr.msk.bf16.vlgmr.msra.gmra.mxu1 %vm822_vm1, %v695_v41 }
  0x42   : > { %1771 = vmatmul.mubr.msk.bf16.vlgmr.msra.gmra.mxu0 %vm822_vm1, %v695_v41 }
  0xa4   : > { %v720_v59 = vpop.permute.xlu0 %719 }
  0xf5   : > { %v926_v63 = vpop.f32.mrf.mxu1 }
  0xf6   : > { %v885_v62 = vpop.f32.mrf.mxu0  ;;  %v927_v1 = vadd.f32 %v926_v63, %v720_v59 }
  0xf7   : > { %v886_v0 = vadd.f32 %v885_v62, %v720_v59  ;;  %v928_v3 = vpop.f32.mrf.mxu1 }
  0xf8   : > { %v887_v2 = vpop.f32.mrf.mxu0  ;;  %v929_v6 = vadd.f32 %v928_v3, %v720_v59 }
  0xf9   : > { %v888_v4 = vadd.f32 %v887_v2, %v720_v59  ;;  %v930_v8 = vpop.f32.mrf.mxu1 }
  0xfa   : > { %v889_v7 = vpop.f32.mrf.mxu0  ;;  %v1775_v10 = vpack.c.bf16 %v929_v6, %v927_v1 }
  0xfb   : > { %v1774_v9 = vpack.c.bf16 %v888_v4, %v886_v0  ;;  %v931_v12 = vpop.f32.mrf.mxu1 }
  0xfc   : > { %v890_v11 = vpop.f32.mrf.mxu0  ;;  %v1046_v14 = vrot.slane %v1775_v10, %v1038_v5 }
  0xfd   : > { %v1039_v13 = vrot.slane %v1774_v9, %v1038_v5 }
  0xff   : > { %v1047_v15 = vcombine.low %v1039_v13, %v1046_v14 }
 0x101   : > { %1067 = vst [vmem:[%s687_s18] sm:$0xff] %v1047_v15  ;;  %v1008_v17 = vpop.f32.mrf.mxu1 }
 0x102   : > { %v967_v16 = vpop.f32.mrf.mxu0 }
 0x103   : > { %v1010_v19 = vpop.f32.mrf.mxu1 }
 0x104   : > { %v969_v18 = vpop.f32.mrf.mxu0  ;;  %1075 = sbr.rel (!%p1995_p6) target bundleno = 266 (0x10a), region = 102 }
 0x105   : > { %v1012_v21 = vpop.f32.mrf.mxu1 }
 0x106   : > { %v971_v20 = vpop.f32.mrf.mxu0 }
 0x107   : > { %v1013_v23 = vpop.f32.mrf.mxu1 }
 0x108   : > { %v972_v22 = vpop.f32.mrf.mxu0  ;;  %v1105_v24 = vld [vmem:[%s687_s18] sm:$0xf] (%p1995_p6) }
 0x109   : > { %1106 = vst [vmem:[%s1083_s23] sm:$0xf] %v1105_v24 }
 0x10a PF: > { %s13_s16 = sadd.s32 1, %s1932_s16   ;;  %s2086_s12 = smov %s1920_s13 }
 0x10b   : > { %p10_p12 = scmp.ge.s32.totalorder %s13_s16, 4   ;;  %s2087_s13 = smov %s2000_s22 }
 0x10c   : > { %s2088_s14 = smov %s1928_s15  ;;  %s2089_s15 = smov %s2091_s17 }
 0x10d   :  { %12 = sbr.rel (!%p10_p12) target bundleno = 3 (0x3), region = 323 }

// kernel: esa_forward.13
= control target key start
LH: loop header
LB: loop body
LE: loop exit
PB: predicated region body
PF: predicated region fallthrough
CT: control target
= control target key end

     0   :  { %s1469_s6 = smov 0   ;;  %s1471_s7 = smov 0   ;;  %s1541_s0 = inlined_call_operand.vmem [shape: bf16[2,7,4,45], index: 0, kind: input, shape index: {}]   ;;  %s1542_s1 = inlined_call_operand.vmem [shape: bf16[2,4,45], index: 1, kind: output, shape index: {}]  }
   0x1   :  { %s1473_s8 = smov 0   ;;  %s1475_s9 = smov 0  }
   0x2   :  { %s1477_s10 = smov 0  }
   0x3 LB: > { %s23_s11 = sadd.s32 1, %s1453_s9  ;;  %s1353_s12 = sadd.s32 4294967295, %s1457_s10   ;;  %s1457_s10 = sphi %s1477_s10, %s11_s10   ;;  %s1453_s9 = sphi %s1475_s9, %s1547_s9   ;;  %s1449_s8 = sphi %s1473_s8, %s1546_s8   ;;  %s1445_s7 = sphi %s1471_s7, %s1545_s7   ;;  %s1441_s6 = sphi %s1469_s6, %s1544_s6  }
   0x4   : > { %p25_p0 = scmp.ge.s32.totalorder %s23_s11, 2  ;;  %p39_p1 = scmp.ne.s32.totalorder %s1445_s7, %s1441_s6 }
   0x5   : > { %p40_p2 = scmp.eq.s32.totalorder %s1457_s10, 0  ;;  %p71_p4 = scmp.eq.s32.totalorder %s1353_s12, 1 }
   0x6   : > { %s1549_s11 = smov (%p25_p0, %s23_s11), 0  ;;  %s32_s14 = sadd.s32 1, %s1445_s7 }
   0x7   : > { %p41_p3 = por %p40_p2, %p39_p1  ;;  %s27_s13 = ssub.s32 %s1453_s9, %s1549_s11 }
   0x8   : > { %p30_p5 = scmp.eq.s32.totalorder %s27_s13, 0  ;;  %p1504_p6 = por %p71_p4, %p39_p1 }
   0x9   : > { %p1356_p7 = scmp.ge.s32.totalorder %s1457_s10, 2 }
   0xa   : > { %s1509_s16 = scalar_select %p30_p5, %s1445_s7, %s32_s14  }
   0xb   : > { %93 = sbr.rel (%p1356_p7) target bundleno = 26 (0x1a), region = 16 }
  0x10   : > { %96 = sbr.rel (!%p41_p3) target bundleno = 26 (0x1a), region = 20  ;;  %s98_s17 = sand.u32 (%p41_p3), 1, %s1445_s7  }
  0x11   : > { %s1377_s18 = smul.u32 (%p41_p3), 14, %s1453_s9 }
  0x12   : > { %s1376_s19 = smul.u32 (%p41_p3), 112, %s98_s17 }
  0x13   : > { %s108_s22 = scalar_lea.vmem (%p41_p3), %s1541_s0, %s1377_s18 }
  0x14   : > { %v130_v0 = vld [vmem:[%s108_s22] sm:$0x3] (%p41_p3)  ;;  %v132_v1 = vld [vmem:[%s108_s22 + $0x2] sm:$0x3] (%p41_p3)  ;;  %s100_s23 = scalar_lea.vmem (%p41_p3), [#allocation2], %s1376_s19 }
  0x15   : > { %131 = vst [vmem:[%s100_s23] sm:$0x3] %v130_v0  ;;  %133 = vst [vmem:[%s100_s23 + $0x10] sm:$0x3] %v132_v1  ;;  %v134_v2 = vld [vmem:[%s108_s22 + $0x4] sm:$0x3] }
  0x16   : > { %v136_v3 = vld [vmem:[%s108_s22 + $0x6] sm:$0x3]  ;;  %v138_v4 = vld [vmem:[%s108_s22 + $0x8] sm:$0x3]  ;;  %135 = vst [vmem:[%s100_s23 + $0x20] sm:$0x3] %v134_v2 }
  0x17   : > { %137 = vst [vmem:[%s100_s23 + $0x30] sm:$0x3] %v136_v3  ;;  %139 = vst [vmem:[%s100_s23 + $0x40] sm:$0x3] %v138_v4  ;;  %v140_v5 = vld [vmem:[%s108_s22 + $0xa] sm:$0x3] }
  0x18   : > { %v142_v6 = vld [vmem:[%s108_s22 + $0xc] sm:$0x3]  ;;  %141 = vst [vmem:[%s100_s23 + $0x50] sm:$0x3] %v140_v5 }
  0x19   : > { %143 = vst [vmem:[%s100_s23 + $0x60] sm:$0x3] %v142_v6 }
  0x1a PF: > { %p1362_p8 = scmp.ge.s32.totalorder %s1457_s10, 1  ;;  %p643_p9 = scmp.lt.s32.totalorder %s1457_s10, 3 }
  0x1c   : > { %p644_p10 = pnand %p1362_p8, %p643_p9 }
  0x1d   : > { %s650_s24 = sand.u32 (!%p644_p10), 1, %s1441_s6  }
  0x1e   : > { %647 = sbr.rel (%p644_p10) target bundleno = 54 (0x36), region = 86  ;;  %s1363_s27 = sshll.u32 (!%p644_p10), %s650_s24, 4 }
  0x1f   : > { %s1378_s25 = smul.u32 (!%p644_p10), 112, %s650_s24  ;;  %s667_s28 = scalar_lea.vmem (!%p644_p10), [#allocation3], %s1363_s27 }
  0x21   : > { %s652_s26 = scalar_lea.vmem (!%p644_p10), [#allocation2], %s1378_s25 }
  0x23   : > { %v674_v7 = vld [vmem:[%s652_s26] sm:$0xff]  ;;  %v676_v8 = vld [vmem:[%s652_s26 + $0x10] sm:$0xff]  ;;  %s1365_s29 = sshll.u32 (%p1504_p6), %s1449_s8, 1 }
  0x24   : > { %v678_v9 = vld [vmem:[%s652_s26 + $0x20] sm:$0xff]  ;;  %v680_v10 = vld [vmem:[%s652_s26 + $0x30] sm:$0xff]  ;;  %s715_s3 = scalar_lea.vmem (%p1504_p6), %s1542_s1, %s1365_s29 }
  0x25   : > { %v682_v11 = vld [vmem:[%s652_s26 + $0x40] sm:$0xff]  ;;  %v684_v12 = vld [vmem:[%s652_s26 + $0x50] sm:$0xff]  ;;  %v688_v13 = vmax.bf16 %v678_v9, %v674_v7  ;;  %v689_v15 = vmax.bf16 %v680_v10, %v676_v8 }
  0x26   : > { %v686_v14 = vld [vmem:[%s652_s26 + $0x60] sm:$0xff] }
  0x27   : > { %v690_v16 = vmax.bf16 %v688_v13, %v682_v11  ;;  %v691_v17 = vmax.bf16 %v689_v15, %v684_v12 }
  0x29   : > { %v692_v18 = vmax.bf16 %v690_v16, %v686_v14  ;;  %708 = sbr.rel (!%p1504_p6) target bundleno = 54 (0x36), region = 94 }
  0x2b   : > { %v693_v19 = vmax.bf16 %v692_v18, %v691_v17 }
  0x2d   : > { %700 = vst [vmem:[%s667_s28] sm:$0xff] %v693_v19 }
  0x34   : > { %v737_v20 = vld [vmem:[%s667_s28] sm:$0x3] }
  0x35   : > { %738 = vst [vmem:[%s715_s3] sm:$0x3] %v737_v20 }
  0x36 PF: > { %s11_s10 = sadd.s32 1, %s1457_s10   ;;  %s1544_s6 = smov %s1445_s7 }
  0x37   : > { %p8_p11 = scmp.ge.s32.totalorder %s11_s10, 4   ;;  %s1545_s7 = smov %s1509_s16 }
  0x38   : > { %s1546_s8 = smov %s1453_s9  ;;  %s1547_s9 = smov %s1549_s11 }
  0x39   :  { %10 = sbr.rel (!%p8_p11) target bundleno = 3 (0x3), region = 315 }

// kernel: esa_forward.14
= control target key start
LH: loop header
LB: loop body
LE: loop exit
PB: predicated region body
PF: predicated region fallthrough
CT: control target
= control target key end

     0   :  { %s1469_s6 = smov 0   ;;  %s1471_s7 = smov 0   ;;  %s1541_s0 = inlined_call_operand.vmem [shape: bf16[2,7,4,9], index: 0, kind: input, shape index: {}]   ;;  %s1542_s1 = inlined_call_operand.vmem [shape: bf16[2,4,9], index: 1, kind: output, shape index: {}]  }
   0x1   :  { %s1473_s8 = smov 0   ;;  %s1475_s9 = smov 0  }
   0x2   :  { %s1477_s10 = smov 0  }
   0x3 LB: > { %s23_s11 = sadd.s32 1, %s1453_s9  ;;  %s1353_s12 = sadd.s32 4294967295, %s1457_s10   ;;  %s1457_s10 = sphi %s1477_s10, %s11_s10   ;;  %s1453_s9 = sphi %s1475_s9, %s1547_s9   ;;  %s1449_s8 = sphi %s1473_s8, %s1546_s8   ;;  %s1445_s7 = sphi %s1471_s7, %s1545_s7   ;;  %s1441_s6 = sphi %s1469_s6, %s1544_s6  }
   0x4   : > { %p25_p0 = scmp.ge.s32.totalorder %s23_s11, 2  ;;  %p39_p1 = scmp.ne.s32.totalorder %s1445_s7, %s1441_s6 }
   0x5   : > { %p40_p2 = scmp.eq.s32.totalorder %s1457_s10, 0  ;;  %p71_p4 = scmp.eq.s32.totalorder %s1353_s12, 1 }
   0x6   : > { %s1549_s11 = smov (%p25_p0, %s23_s11), 0  ;;  %s32_s14 = sadd.s32 1, %s1445_s7 }
   0x7   : > { %p41_p3 = por %p40_p2, %p39_p1  ;;  %s27_s13 = ssub.s32 %s1453_s9, %s1549_s11 }
   0x8   : > { %p30_p5 = scmp.eq.s32.totalorder %s27_s13, 0  ;;  %p1504_p6 = por %p71_p4, %p39_p1 }
   0x9   : > { %p1356_p7 = scmp.ge.s32.totalorder %s1457_s10, 2 }
   0xa   : > { %s1509_s16 = scalar_select %p30_p5, %s1445_s7, %s32_s14  }
   0xb   : > { %93 = sbr.rel (%p1356_p7) target bundleno = 26 (0x1a), region = 16 }
  0x10   : > { %96 = sbr.rel (!%p41_p3) target bundleno = 26 (0x1a), region = 20  ;;  %s98_s17 = sand.u32 (%p41_p3), 1, %s1445_s7  }
  0x11   : > { %s1377_s18 = smul.u32 (%p41_p3), 14, %s1453_s9 }
  0x12   : > { %s1376_s19 = smul.u32 (%p41_p3), 112, %s98_s17 }
  0x13   : > { %s108_s22 = scalar_lea.vmem (%p41_p3), %s1541_s0, %s1377_s18 }
  0x14   : > { %v130_v0 = vld [vmem:[%s108_s22] sm:$0x3] (%p41_p3)  ;;  %v132_v1 = vld [vmem:[%s108_s22 + $0x2] sm:$0x3] (%p41_p3)  ;;  %s100_s23 = scalar_lea.vmem (%p41_p3), [#allocation2], %s1376_s19 }
  0x15   : > { %131 = vst [vmem:[%s100_s23] sm:$0x3] %v130_v0  ;;  %133 = vst [vmem:[%s100_s23 + $0x10] sm:$0x3] %v132_v1  ;;  %v134_v2 = vld [vmem:[%s108_s22 + $0x4] sm:$0x3] }
  0x16   : > { %v136_v3 = vld [vmem:[%s108_s22 + $0x6] sm:$0x3]  ;;  %v138_v4 = vld [vmem:[%s108_s22 + $0x8] sm:$0x3]  ;;  %135 = vst [vmem:[%s100_s23 + $0x20] sm:$0x3] %v134_v2 }
  0x17   : > { %137 = vst [vmem:[%s100_s23 + $0x30] sm:$0x3] %v136_v3  ;;  %139 = vst [vmem:[%s100_s23 + $0x40] sm:$0x3] %v138_v4  ;;  %v140_v5 = vld [vmem:[%s108_s22 + $0xa] sm:$0x3] }
  0x18   : > { %v142_v6 = vld [vmem:[%s108_s22 + $0xc] sm:$0x3]  ;;  %141 = vst [vmem:[%s100_s23 + $0x50] sm:$0x3] %v140_v5 }
  0x19   : > { %143 = vst [vmem:[%s100_s23 + $0x60] sm:$0x3] %v142_v6 }
  0x1a PF: > { %p1362_p8 = scmp.ge.s32.totalorder %s1457_s10, 1  ;;  %p643_p9 = scmp.lt.s32.totalorder %s1457_s10, 3 }
  0x1c   : > { %p644_p10 = pnand %p1362_p8, %p643_p9 }
  0x1d   : > { %s650_s24 = sand.u32 (!%p644_p10), 1, %s1441_s6  }
  0x1e   : > { %647 = sbr.rel (%p644_p10) target bundleno = 54 (0x36), region = 86  ;;  %s1363_s27 = sshll.u32 (!%p644_p10), %s650_s24, 4 }
  0x1f   : > { %s1378_s25 = smul.u32 (!%p644_p10), 112, %s650_s24  ;;  %s667_s28 = scalar_lea.vmem (!%p644_p10), [#allocation3], %s1363_s27 }
  0x21   : > { %s652_s26 = scalar_lea.vmem (!%p644_p10), [#allocation2], %s1378_s25 }
  0x23   : > { %v674_v7 = vld [vmem:[%s652_s26] sm:$0xff]  ;;  %v676_v8 = vld [vmem:[%s652_s26 + $0x10] sm:$0xff]  ;;  %s1365_s29 = sshll.u32 (%p1504_p6), %s1449_s8, 1 }
  0x24   : > { %v678_v9 = vld [vmem:[%s652_s26 + $0x20] sm:$0xff]  ;;  %v680_v10 = vld [vmem:[%s652_s26 + $0x30] sm:$0xff]  ;;  %s715_s3 = scalar_lea.vmem (%p1504_p6), %s1542_s1, %s1365_s29 }
  0x25   : > { %v682_v11 = vld [vmem:[%s652_s26 + $0x40] sm:$0xff]  ;;  %v684_v12 = vld [vmem:[%s652_s26 + $0x50] sm:$0xff]  ;;  %v688_v13 = vmax.bf16 %v678_v9, %v674_v7  ;;  %v689_v15 = vmax.bf16 %v680_v10, %v676_v8 }
  0x26   : > { %v686_v14 = vld [vmem:[%s652_s26 + $0x60] sm:$0xff] }
  0x27   : > { %v690_v16 = vmax.bf16 %v688_v13, %v682_v11  ;;  %v691_v17 = vmax.bf16 %v689_v15, %v684_v12 }
  0x29   : > { %v692_v18 = vmax.bf16 %v690_v16, %v686_v14  ;;  %708 = sbr.rel (!%p1504_p6) target bundleno = 54 (0x36), region = 94 }
  0x2b   : > { %v693_v19 = vmax.bf16 %v692_v18, %v691_v17 }
  0x2d   : > { %700 = vst [vmem:[%s667_s28] sm:$0xff] %v693_v19 }
  0x34   : > { %v737_v20 = vld [vmem:[%s667_s28] sm:$0x3] }
  0x35   : > { %738 = vst [vmem:[%s715_s3] sm:$0x3] %v737_v20 }
  0x36 PF: > { %s11_s10 = sadd.s32 1, %s1457_s10   ;;  %s1544_s6 = smov %s1445_s7 }
  0x37   : > { %p8_p11 = scmp.ge.s32.totalorder %s11_s10, 4   ;;  %s1545_s7 = smov %s1509_s16 }
  0x38   : > { %s1546_s8 = smov %s1453_s9  ;;  %s1547_s9 = smov %s1549_s11 }
  0x39   :  { %10 = sbr.rel (!%p8_p11) target bundleno = 3 (0x3), region = 315 }

// kernel: esa_forward.15
= control target key start
LH: loop header
LB: loop body
LE: loop exit
PB: predicated region body
PF: predicated region fallthrough
CT: control target
= control target key end

     0   :  { %s1907_s12 = smov 0   ;;  %s1909_s13 = smov 0   ;;  %s2028_s0 = inlined_call_operand.vmem [shape: bf16[4,36], index: 0, kind: input, shape index: {}]   ;;  %s2029_s1 = inlined_call_operand.vmem [shape: f32[4,1], index: 1, kind: input, shape index: {}]   ;;  %s2030_s2 = inlined_call_operand.vmem [shape: bf16[2,36,9], index: 2, kind: input, shape index: {}]   ;;  %s2031_s3 = inlined_call_operand.vmem [shape: bf16[2,4,9], index: 3, kind: output, shape index: {}]  }
   0x1   :  { %s1911_s14 = smov 0   ;;  %s1913_s15 = smov 0  }
   0x2   :  { %s1915_s16 = smov 0  }
   0x3 LB: > { %s25_s17 = sadd.s32 1, %s1879_s15  ;;  %s1728_s18 = sadd.s32 4294967295, %s1883_s16   ;;  %s1883_s16 = sphi %s1915_s16, %s13_s16   ;;  %s1879_s15 = sphi %s1913_s15, %s2036_s15   ;;  %s1875_s14 = sphi %s1911_s14, %s2035_s14   ;;  %s1871_s13 = sphi %s1909_s13, %s2034_s13   ;;  %s1867_s12 = sphi %s1907_s12, %s2033_s12  }
   0x4   : > { %p27_p0 = scmp.ge.s32.totalorder %s25_s17, 2  ;;  %p83_p1 = scmp.ne.s32.totalorder %s1871_s13, %s1867_s12 }
   0x5   : > { %p84_p2 = scmp.eq.s32.totalorder %s1883_s16, 0  ;;  %p115_p4 = scmp.eq.s32.totalorder %s1728_s18, 1 }
   0x6   : > { %s2038_s17 = smov (%p27_p0, %s25_s17), 0  ;;  %s76_s20 = sadd.s32 1, %s1871_s13 }
   0x7   : > { %p85_p3 = por %p84_p2, %p83_p1  ;;  %s71_s19 = ssub.s32 %s1879_s15, %s2038_s17 }
   0x8   : > { %p74_p5 = scmp.eq.s32.totalorder %s71_s19, 0  ;;  %p1942_p6 = por %p115_p4, %p83_p1 }
   0x9   : > { %p1731_p7 = scmp.ge.s32.totalorder %s1883_s16, 2 }
   0xa   : > { %s1947_s22 = scalar_select %p74_p5, %s1871_s13, %s76_s20  }
   0xb   : > { %143 = sbr.rel (%p1731_p7) target bundleno = 24 (0x18), region = 24 }
  0x10   : > { %146 = sbr.rel (!%p85_p3) target bundleno = 24 (0x18), region = 28  ;;  %s148_s23 = sand.u32 (%p85_p3), 1, %s1871_s13  }
  0x11   : > { %s1792_s24 = smul.u32 (%p85_p3), 20, %s1879_s15 }
  0x12   : > { %s1791_s25 = smul.u32 (%p85_p3), 160, %s148_s23 }
  0x13   : > { %s158_s28 = scalar_lea.vmem (%p85_p3), %s2030_s2, %s1792_s24 }
  0x14   : > { %v180_v0 = vld [vmem:[%s158_s28] sm:$0xf] (%p85_p3)  ;;  %v182_v1 = vld [vmem:[%s158_s28 + $0x4] sm:$0xf] (%p85_p3)  ;;  %s150_s29 = scalar_lea.vmem (%p85_p3), [#allocation2], %s1791_s25 }
  0x15   : > { %181 = vst [vmem:[%s150_s29] sm:$0xf] %v180_v0  ;;  %183 = vst [vmem:[%s150_s29 + $0x20] sm:$0xf] %v182_v1  ;;  %v184_v2 = vld [vmem:[%s158_s28 + $0x8] sm:$0xf] }
  0x16   : > { %v186_v3 = vld [vmem:[%s158_s28 + $0xc] sm:$0xf]  ;;  %v188_v4 = vld [vmem:[%s158_s28 + $0x10] sm:$0xf]  ;;  %185 = vst [vmem:[%s150_s29 + $0x40] sm:$0xf] %v184_v2 }
  0x17   : > { %187 = vst [vmem:[%s150_s29 + $0x60] sm:$0xf] %v186_v3  ;;  %189 = vst [vmem:[%s150_s29 + $0x80] sm:$0xf] %v188_v4 }
  0x18 PF: > { %p1741_p8 = scmp.ge.s32.totalorder %s1883_s16, 1  ;;  %p659_p9 = scmp.lt.s32.totalorder %s1883_s16, 3 }
  0x1a   : > { %p660_p10 = pnand %p1741_p8, %p659_p9 }
  0x1b   : > { %s666_s30 = sand.u32 (!%p660_p10), 1, %s1867_s12  }
  0x1c   : > { %663 = sbr.rel (%p660_p10) target bundleno = 263 (0x107), region = 94  ;;  %s1742_s10 = sshll.u32 (!%p660_p10), %s666_s30, 4 }
  0x1d   : > { %s1793_s4 = smul.u32 (!%p660_p10), 160, %s666_s30  ;;  %s687_s11 = scalar_lea.vmem (!%p660_p10), [#allocation3], %s1742_s10 }
  0x1f   : > { %s1966_s7 = scalar_lea.vmem (!%p660_p10), [#allocation2], %s1793_s4 }
  0x21   : > { %v1885_v5 = vmov 0   ;;  %v716_v6 = vld [vmem:[%s2029_s1] sm:$0xf]  ;;  %vm826_vm0 = vcmask 1041408   ;;  %v713_v8 = vld [vmem:[%s1966_s7 + $0x88] sm:$0x33]  ;;  %v1044_v58 = vlaneseq }
  0x22   : > { %883 = vmatprep.mubr.bf16.mxu0 %v1885_v5  ;;  %924 = vmatprep.mubr.bf16.mxu1 %v1885_v5  ;;  %v712_v7 = vld [vmem:[%s1966_s7 + $0x80] sm:$0x33]  ;;  %v1762_v11 = vcombine.high %v713_v8, %v713_v8  ;;  %v1761_v13 = vcombine.low %v713_v8, %v713_v8  ;;  %v705_v15 = vld [vmem:[%s1966_s7 + $0x48] sm:$0xff]  ;;  %v714_v29 = vld [vmem:[%s1966_s7 + $0x90] sm:$0x33]  ;;  %vm822_vm1 = vcmask 293888  }
  0x23   : > { %1836 = vset.pattern.permute.xlu0 %v1885_v5  ;;  %v704_v9 = vld [vmem:[%s1966_s7 + $0x40] sm:$0xff]  ;;  %v1760_v10 = vcombine.high %v712_v7, %v712_v7  ;;  %v1759_v12 = vcombine.low %v712_v7, %v712_v7  ;;  %v709_v16 = vld [vmem:[%s1966_s7 + $0x68] sm:$0xff]  ;;  %v715_v30 = vld [vmem:[%s1966_s7 + $0x98] sm:$0x33]  ;;  %v1764_v33 = vcombine.high %v714_v29, %v714_v29  ;;  %v1763_v35 = vcombine.low %v714_v29, %v714_v29  ;;  %s1780_s12 = sshll.u32 (%p1942_p6), %s1875_s14, 1 }
  0x24   : > { %719 = vperm.xlu0 %1836, %v716_v6   ;;  %v708_v14 = vld [vmem:[%s1966_s7 + $0x60] sm:$0xff]  ;;  %v1754_v18 = vcombine.high %v705_v15, %v709_v16  ;;  %v697_v21 = vld [vmem:[%s1966_s7 + $0x8] sm:$0xff]  ;;  %1769 = vmatprep.subr.msk.bf16.mxu1 %vm826_vm0, %v1762_v11  ;;  %v834_v23 = vsel %vm826_vm0, %v1761_v13, 0  ;;  %v1753_v26 = vcombine.low %v705_v15, %v709_v16  ;;  %v1766_v34 = vcombine.high %v715_v30, %v715_v30  ;;  %v706_v37 = vld [vmem:[%s1966_s7 + $0x50] sm:$0xff]  ;;  %s1090_s20 = scalar_lea.vmem (%p1942_p6), %s2031_s3, %s1780_s12 }
  0x25   : > { %v1752_v17 = vcombine.high %v704_v9, %v708_v14  ;;  %v696_v19 = vld [vmem:[%s1966_s7] sm:$0xff]  ;;  %1767 = vmatprep.subr.msk.bf16.mxu0 %vm826_vm0, %v1760_v10  ;;  %v828_v22 = vsel %vm826_vm0, %v1759_v12, 0  ;;  %v701_v24 = vld [vmem:[%s1966_s7 + $0x28] sm:$0xff]  ;;  %903 = vmatpush1.bf16.msra.mxu1 %v834_v23  ;;  %v1751_v25 = vcombine.low %v704_v9, %v708_v14  ;;  %v1765_v36 = vcombine.low %v715_v30, %v715_v30  ;;  %v710_v38 = vld [vmem:[%s1966_s7 + $0x70] sm:$0xff] }
  0x26   : > { %v700_v20 = vld [vmem:[%s1966_s7 + $0x20] sm:$0xff]  ;;  %862 = vmatpush1.bf16.msra.mxu0 %v828_v22  ;;  %904 = vmatprep.subr.bf16.mxu1 %v1754_v18  ;;  %v1746_v28 = vcombine.high %v697_v21, %v701_v24  ;;  %v1745_v32 = vcombine.low %v697_v21, %v701_v24  ;;  %v707_v39 = vld [vmem:[%s1966_s7 + $0x58] sm:$0xff]  ;;  %v840_v42 = vsel %vm826_vm0, %v1763_v35, 0  ;;  %v1756_v44 = vcombine.high %v706_v37, %v710_v38  ;;  %v698_v46 = vld [vmem:[%s1966_s7 + $0x10] sm:$0xff] }
  0x27   : > { %863 = vmatprep.subr.bf16.mxu0 %v1752_v17  ;;  %v1744_v27 = vcombine.high %v696_v19, %v700_v20  ;;  %v1743_v31 = vcombine.low %v696_v19, %v700_v20  ;;  %v711_v40 = vld [vmem:[%s1966_s7 + $0x78] sm:$0xff]  ;;  %v695_v41 = vld [vmem:[%s2028_s0] sm:$0x3]  ;;  %v846_v43 = vsel %vm826_vm0, %v1765_v36, 0  ;;  %v702_v47 = vld [vmem:[%s1966_s7 + $0x30] sm:$0xff]  ;;  %v1755_v50 = vcombine.low %v706_v37, %v710_v38 }
  0x28   : > { %v1758_v45 = vcombine.high %v707_v39, %v711_v40  ;;  %v699_v48 = vld [vmem:[%s1966_s7 + $0x18] sm:$0xff]  ;;  %v1757_v51 = vcombine.low %v707_v39, %v711_v40  ;;  %v1748_v52 = vcombine.high %v698_v46, %v702_v47  ;;  %v1747_v54 = vcombine.low %v698_v46, %v702_v47 }
  0x29   : > { %905 = vmatpush1.bf16.msra.mxu1 %v1753_v26  ;;  %v703_v49 = vld [vmem:[%s1966_s7 + $0x38] sm:$0xff]  ;;  %v1886_v56 = vmov 1983009808   ;;  %v1045_v0 = vshrl.u32 %v1044_v58, 7 }
  0x2a   : > { %864 = vmatpush1.bf16.msra.mxu0 %v1751_v25  ;;  %906 = vmatprep.subr.bf16.mxu1 %v1746_v28  ;;  %v1750_v53 = vcombine.high %v699_v48, %v703_v49  ;;  %v1749_v55 = vcombine.low %v699_v48, %v703_v49  ;;  %v1042_v57 = vunpack.c.l.s4 %v1886_v56 }
  0x2b   : > { %865 = vmatprep.subr.bf16.mxu0 %v1744_v27 }
  0x2c   : > { %v1043_v63 = vunpack.c.0.s8 %v1042_v57 }
  0x2d   : > { %907 = vmatpush1.bf16.msra.mxu1 %v1745_v32 }
  0x2e   : > { %866 = vmatpush1.bf16.msra.mxu0 %v1743_v31  ;;  %1773 = vmatprep.subr.msk.bf16.mxu1 %vm826_vm0, %v1766_v34  ;;  %v1046_v11 = vsub.s32 %v1043_v63, %v1045_v0 }
  0x2f   : > { %1771 = vmatprep.subr.msk.bf16.mxu0 %vm826_vm0, %v1764_v33 }
  0x30   : > { %1770 = vmatmul.mubr.msk.bf16.vlgmr.msra.gmra.mxu1 %vm822_vm1, %v695_v41 }
  0x31   : > { %1768 = vmatmul.mubr.msk.bf16.vlgmr.msra.gmra.mxu0 %vm822_vm1, %v695_v41  ;;  %985 = vmatpush1.bf16.msra.mxu1 %v846_v43 }
  0x32   : > { %944 = vmatpush1.bf16.msra.mxu0 %v840_v42  ;;  %986 = vmatprep.subr.bf16.mxu1 %v1758_v45 }
  0x33   : > { %945 = vmatprep.subr.bf16.mxu0 %v1756_v44  ;;  %965 = vmatprep.mubr.bf16.mxu0 %v1885_v5 }
  0x34   : > { %1006 = vmatprep.mubr.bf16.mxu1 %v1885_v5 }
  0x35   : > { %987 = vmatpush1.bf16.msra.mxu1 %v1757_v51 }
  0x36   : > { %946 = vmatpush1.bf16.msra.mxu0 %v1755_v50  ;;  %988 = vmatprep.subr.bf16.mxu1 %v1750_v53 }
  0x37   : > { %947 = vmatprep.subr.bf16.mxu0 %v1748_v52 }
  0x39   : > { %989 = vmatpush1.bf16.msra.mxu1 %v1749_v55 }
  0x3a   : > { %948 = vmatpush1.bf16.msra.mxu0 %v1747_v54 }
  0x3c   : > { %1774 = vmatmul.mubr.msk.bf16.vlgmr.msra.gmra.mxu1 %vm822_vm1, %v695_v41 }
  0x3d   : > { %1772 = vmatmul.mubr.msk.bf16.vlgmr.msra.gmra.mxu0 %vm822_vm1, %v695_v41 }
  0x9f   : > { %v720_v59 = vpop.permute.xlu0 %719 }
  0xf0   : > { %v926_v61 = vpop.f32.mrf.mxu1 }
  0xf1   : > { %v885_v60 = vpop.f32.mrf.mxu0  ;;  %v927_v1 = vadd.f32 %v926_v61, %v720_v59 }
  0xf2   : > { %v886_v62 = vadd.f32 %v885_v60, %v720_v59  ;;  %v928_v3 = vpop.f32.mrf.mxu1 }
  0xf3   : > { %v887_v2 = vpop.f32.mrf.mxu0  ;;  %v929_v6 = vadd.f32 %v928_v3, %v720_v59  ;;  %v1017_v7 = vmax.f32 %v927_v1, 0.0 }
  0xf4   : > { %v888_v4 = vadd.f32 %v887_v2, %v720_v59  ;;  %v1015_v5 = vmax.f32 %v886_v62, 0.0  ;;  %v930_v9 = vpop.f32.mrf.mxu1 }
  0xf5   : > { %v889_v8 = vpop.f32.mrf.mxu0  ;;  %v1018_v12 = vmax.f32 %v929_v6, 0.0 }
  0xf6   : > { %v1016_v10 = vmax.f32 %v888_v4, 0.0  ;;  %v931_v14 = vpop.f32.mrf.mxu1 }
  0xf7   : > { %v890_v13 = vpop.f32.mrf.mxu0  ;;  %v1776_v16 = vpack.c.bf16 %v1018_v12, %v1017_v7 }
  0xf8   : > { %v1775_v15 = vpack.c.bf16 %v1016_v10, %v1015_v5 }
  0xf9   : > { %v1054_v18 = vrot.slane %v1776_v16, %v1046_v11 }
  0xfa   : > { %v1047_v17 = vrot.slane %v1775_v15, %v1046_v11 }
  0xfc   : > { %v1055_v19 = vcombine.low %v1047_v17, %v1054_v18  ;;  %v1008_v21 = vpop.f32.mrf.mxu1 }
  0xfd   : > { %v967_v20 = vpop.f32.mrf.mxu0 }
  0xfe   : > { %1075 = vst [vmem:[%s687_s11] sm:$0xff] %v1055_v19  ;;  %v1010_v23 = vpop.f32.mrf.mxu1 }
  0xff   : > { %v969_v22 = vpop.f32.mrf.mxu0  ;;  %1083 = sbr.rel (!%p1942_p6) target bundleno = 263 (0x107), region = 102 }
 0x100   : > { %v1012_v25 = vpop.f32.mrf.mxu1 }
 0x101   : > { %v971_v24 = vpop.f32.mrf.mxu0 }
 0x102   : > { %v1013_v27 = vpop.f32.mrf.mxu1 }
 0x103   : > { %v972_v26 = vpop.f32.mrf.mxu0 }
 0x105   : > { %v1112_v28 = vld [vmem:[%s687_s11] sm:$0x3] }
 0x106   : > { %1113 = vst [vmem:[%s1090_s20] sm:$0x3] %v1112_v28 }
 0x107 PF: > { %s13_s16 = sadd.s32 1, %s1883_s16   ;;  %s2033_s12 = smov %s1871_s13 }
 0x108   : > { %p10_p11 = scmp.ge.s32.totalorder %s13_s16, 4   ;;  %s2034_s13 = smov %s1947_s22 }
 0x109   : > { %s2035_s14 = smov %s1879_s15  ;;  %s2036_s15 = smov %s2038_s17 }
 0x10a   :  { %12 = sbr.rel (!%p10_p11) target bundleno = 3 (0x3), region = 323 }

// kernel: esa_forward.17
= control target key start
LH: loop header
LB: loop body
LE: loop exit
PB: predicated region body
PF: predicated region fallthrough
CT: control target
= control target key end

     0   :  { %s1899_s12 = smov 0   ;;  %s1901_s13 = smov 0   ;;  %s2020_s0 = inlined_call_operand.vmem [shape: bf16[4,36], index: 0, kind: input, shape index: {}]   ;;  %s2021_s1 = inlined_call_operand.vmem [shape: f32[4,1], index: 1, kind: input, shape index: {}]   ;;  %s2022_s2 = inlined_call_operand.vmem [shape: bf16[2,36,9], index: 2, kind: input, shape index: {}]   ;;  %s2023_s3 = inlined_call_operand.vmem [shape: bf16[2,4,9], index: 3, kind: output, shape index: {}]  }
   0x1   :  { %s1903_s14 = smov 0   ;;  %s1905_s15 = smov 0  }
   0x2   :  { %s1907_s16 = smov 0  }
   0x3 LB: > { %s25_s17 = sadd.s32 1, %s1871_s15  ;;  %s1720_s18 = sadd.s32 4294967295, %s1875_s16   ;;  %s1875_s16 = sphi %s1907_s16, %s13_s16   ;;  %s1871_s15 = sphi %s1905_s15, %s2028_s15   ;;  %s1867_s14 = sphi %s1903_s14, %s2027_s14   ;;  %s1863_s13 = sphi %s1901_s13, %s2026_s13   ;;  %s1859_s12 = sphi %s1899_s12, %s2025_s12  }
   0x4   : > { %p27_p0 = scmp.ge.s32.totalorder %s25_s17, 2  ;;  %p83_p1 = scmp.ne.s32.totalorder %s1863_s13, %s1859_s12 }
   0x5   : > { %p84_p2 = scmp.eq.s32.totalorder %s1875_s16, 0  ;;  %p115_p4 = scmp.eq.s32.totalorder %s1720_s18, 1 }
   0x6   : > { %s2030_s17 = smov (%p27_p0, %s25_s17), 0  ;;  %s76_s20 = sadd.s32 1, %s1863_s13 }
   0x7   : > { %p85_p3 = por %p84_p2, %p83_p1  ;;  %s71_s19 = ssub.s32 %s1871_s15, %s2030_s17 }
   0x8   : > { %p74_p5 = scmp.eq.s32.totalorder %s71_s19, 0  ;;  %p1934_p6 = por %p115_p4, %p83_p1 }
   0x9   : > { %p1723_p7 = scmp.ge.s32.totalorder %s1875_s16, 2 }
   0xa   : > { %s1939_s22 = scalar_select %p74_p5, %s1863_s13, %s76_s20  }
   0xb   : > { %143 = sbr.rel (%p1723_p7) target bundleno = 24 (0x18), region = 24 }
  0x10   : > { %146 = sbr.rel (!%p85_p3) target bundleno = 24 (0x18), region = 28  ;;  %s148_s23 = sand.u32 (%p85_p3), 1, %s1863_s13  }
  0x11   : > { %s1784_s24 = smul.u32 (%p85_p3), 20, %s1871_s15 }
  0x12   : > { %s1783_s25 = smul.u32 (%p85_p3), 160, %s148_s23 }
  0x13   : > { %s158_s28 = scalar_lea.vmem (%p85_p3), %s2022_s2, %s1784_s24 }
  0x14   : > { %v180_v0 = vld [vmem:[%s158_s28] sm:$0xf] (%p85_p3)  ;;  %v182_v1 = vld [vmem:[%s158_s28 + $0x4] sm:$0xf] (%p85_p3)  ;;  %s150_s29 = scalar_lea.vmem (%p85_p3), [#allocation2], %s1783_s25 }
  0x15   : > { %181 = vst [vmem:[%s150_s29] sm:$0xf] %v180_v0  ;;  %183 = vst [vmem:[%s150_s29 + $0x20] sm:$0xf] %v182_v1  ;;  %v184_v2 = vld [vmem:[%s158_s28 + $0x8] sm:$0xf] }
  0x16   : > { %v186_v3 = vld [vmem:[%s158_s28 + $0xc] sm:$0xf]  ;;  %v188_v4 = vld [vmem:[%s158_s28 + $0x10] sm:$0xf]  ;;  %185 = vst [vmem:[%s150_s29 + $0x40] sm:$0xf] %v184_v2 }
  0x17   : > { %187 = vst [vmem:[%s150_s29 + $0x60] sm:$0xf] %v186_v3  ;;  %189 = vst [vmem:[%s150_s29 + $0x80] sm:$0xf] %v188_v4 }
  0x18 PF: > { %p1733_p8 = scmp.ge.s32.totalorder %s1875_s16, 1  ;;  %p659_p9 = scmp.lt.s32.totalorder %s1875_s16, 3 }
  0x1a   : > { %p660_p10 = pnand %p1733_p8, %p659_p9 }
  0x1b   : > { %s666_s30 = sand.u32 (!%p660_p10), 1, %s1859_s12  }
  0x1c   : > { %663 = sbr.rel (%p660_p10) target bundleno = 261 (0x105), region = 94  ;;  %s1734_s10 = sshll.u32 (!%p660_p10), %s666_s30, 4 }
  0x1d   : > { %s1785_s4 = smul.u32 (!%p660_p10), 160, %s666_s30  ;;  %s687_s11 = scalar_lea.vmem (!%p660_p10), [#allocation3], %s1734_s10 }
  0x1f   : > { %s1958_s7 = scalar_lea.vmem (!%p660_p10), [#allocation2], %s1785_s4 }
  0x21   : > { %v1877_v5 = vmov 0   ;;  %v716_v6 = vld [vmem:[%s2021_s1] sm:$0xf]  ;;  %vm826_vm0 = vcmask 1041408   ;;  %v713_v8 = vld [vmem:[%s1958_s7 + $0x88] sm:$0x33]  ;;  %v1036_v58 = vlaneseq }
  0x22   : > { %883 = vmatprep.mubr.bf16.mxu0 %v1877_v5  ;;  %924 = vmatprep.mubr.bf16.mxu1 %v1877_v5  ;;  %v712_v7 = vld [vmem:[%s1958_s7 + $0x80] sm:$0x33]  ;;  %v1754_v11 = vcombine.high %v713_v8, %v713_v8  ;;  %v1753_v13 = vcombine.low %v713_v8, %v713_v8  ;;  %v705_v15 = vld [vmem:[%s1958_s7 + $0x48] sm:$0xff]  ;;  %v714_v29 = vld [vmem:[%s1958_s7 + $0x90] sm:$0x33]  ;;  %vm822_vm1 = vcmask 293888  }
  0x23   : > { %1828 = vset.pattern.permute.xlu0 %v1877_v5  ;;  %v704_v9 = vld [vmem:[%s1958_s7 + $0x40] sm:$0xff]  ;;  %v1752_v10 = vcombine.high %v712_v7, %v712_v7  ;;  %v1751_v12 = vcombine.low %v712_v7, %v712_v7  ;;  %v709_v16 = vld [vmem:[%s1958_s7 + $0x68] sm:$0xff]  ;;  %v715_v30 = vld [vmem:[%s1958_s7 + $0x98] sm:$0x33]  ;;  %v1756_v33 = vcombine.high %v714_v29, %v714_v29  ;;  %v1755_v35 = vcombine.low %v714_v29, %v714_v29  ;;  %s1772_s12 = sshll.u32 (%p1934_p6), %s1867_s14, 1 }
  0x24   : > { %719 = vperm.xlu0 %1828, %v716_v6   ;;  %v708_v14 = vld [vmem:[%s1958_s7 + $0x60] sm:$0xff]  ;;  %v1746_v18 = vcombine.high %v705_v15, %v709_v16  ;;  %v697_v21 = vld [vmem:[%s1958_s7 + $0x8] sm:$0xff]  ;;  %1761 = vmatprep.subr.msk.bf16.mxu1 %vm826_vm0, %v1754_v11  ;;  %v834_v23 = vsel %vm826_vm0, %v1753_v13, 0  ;;  %v1745_v26 = vcombine.low %v705_v15, %v709_v16  ;;  %v1758_v34 = vcombine.high %v715_v30, %v715_v30  ;;  %v706_v37 = vld [vmem:[%s1958_s7 + $0x50] sm:$0xff]  ;;  %s1082_s20 = scalar_lea.vmem (%p1934_p6), %s2023_s3, %s1772_s12 }
  0x25   : > { %v1744_v17 = vcombine.high %v704_v9, %v708_v14  ;;  %v696_v19 = vld [vmem:[%s1958_s7] sm:$0xff]  ;;  %1759 = vmatprep.subr.msk.bf16.mxu0 %vm826_vm0, %v1752_v10  ;;  %v828_v22 = vsel %vm826_vm0, %v1751_v12, 0  ;;  %v701_v24 = vld [vmem:[%s1958_s7 + $0x28] sm:$0xff]  ;;  %903 = vmatpush1.bf16.msra.mxu1 %v834_v23  ;;  %v1743_v25 = vcombine.low %v704_v9, %v708_v14  ;;  %v1757_v36 = vcombine.low %v715_v30, %v715_v30  ;;  %v710_v38 = vld [vmem:[%s1958_s7 + $0x70] sm:$0xff] }
  0x26   : > { %v700_v20 = vld [vmem:[%s1958_s7 + $0x20] sm:$0xff]  ;;  %862 = vmatpush1.bf16.msra.mxu0 %v828_v22  ;;  %904 = vmatprep.subr.bf16.mxu1 %v1746_v18  ;;  %v1738_v28 = vcombine.high %v697_v21, %v701_v24  ;;  %v1737_v32 = vcombine.low %v697_v21, %v701_v24  ;;  %v707_v39 = vld [vmem:[%s1958_s7 + $0x58] sm:$0xff]  ;;  %v840_v42 = vsel %vm826_vm0, %v1755_v35, 0  ;;  %v1748_v44 = vcombine.high %v706_v37, %v710_v38  ;;  %v698_v46 = vld [vmem:[%s1958_s7 + $0x10] sm:$0xff] }
  0x27   : > { %863 = vmatprep.subr.bf16.mxu0 %v1744_v17  ;;  %v1736_v27 = vcombine.high %v696_v19, %v700_v20  ;;  %v1735_v31 = vcombine.low %v696_v19, %v700_v20  ;;  %v711_v40 = vld [vmem:[%s1958_s7 + $0x78] sm:$0xff]  ;;  %v695_v41 = vld [vmem:[%s2020_s0] sm:$0x3]  ;;  %v846_v43 = vsel %vm826_vm0, %v1757_v36, 0  ;;  %v702_v47 = vld [vmem:[%s1958_s7 + $0x30] sm:$0xff]  ;;  %v1747_v50 = vcombine.low %v706_v37, %v710_v38 }
  0x28   : > { %v1750_v45 = vcombine.high %v707_v39, %v711_v40  ;;  %v699_v48 = vld [vmem:[%s1958_s7 + $0x18] sm:$0xff]  ;;  %v1749_v51 = vcombine.low %v707_v39, %v711_v40  ;;  %v1740_v52 = vcombine.high %v698_v46, %v702_v47  ;;  %v1739_v54 = vcombine.low %v698_v46, %v702_v47 }
  0x29   : > { %905 = vmatpush1.bf16.msra.mxu1 %v1745_v26  ;;  %v703_v49 = vld [vmem:[%s1958_s7 + $0x38] sm:$0xff]  ;;  %v1878_v56 = vmov 1983009808   ;;  %v1037_v61 = vshrl.u32 %v1036_v58, 7 }
  0x2a   : > { %864 = vmatpush1.bf16.msra.mxu0 %v1743_v25  ;;  %906 = vmatprep.subr.bf16.mxu1 %v1738_v28  ;;  %v1742_v53 = vcombine.high %v699_v48, %v703_v49  ;;  %v1741_v55 = vcombine.low %v699_v48, %v703_v49  ;;  %v1034_v57 = vunpack.c.l.s4 %v1878_v56 }
  0x2b   : > { %865 = vmatprep.subr.bf16.mxu0 %v1736_v27 }
  0x2c   : > { %v1035_v60 = vunpack.c.0.s8 %v1034_v57 }
  0x2d   : > { %907 = vmatpush1.bf16.msra.mxu1 %v1737_v32 }
  0x2e   : > { %866 = vmatpush1.bf16.msra.mxu0 %v1735_v31  ;;  %1765 = vmatprep.subr.msk.bf16.mxu1 %vm826_vm0, %v1758_v34 }
  0x2f   : > { %1763 = vmatprep.subr.msk.bf16.mxu0 %vm826_vm0, %v1756_v33 }
  0x30   : > { %1762 = vmatmul.mubr.msk.bf16.vlgmr.msra.gmra.mxu1 %vm822_vm1, %v695_v41 }
  0x31   : > { %1760 = vmatmul.mubr.msk.bf16.vlgmr.msra.gmra.mxu0 %vm822_vm1, %v695_v41  ;;  %985 = vmatpush1.bf16.msra.mxu1 %v846_v43 }
  0x32   : > { %944 = vmatpush1.bf16.msra.mxu0 %v840_v42  ;;  %986 = vmatprep.subr.bf16.mxu1 %v1750_v45 }
  0x33   : > { %945 = vmatprep.subr.bf16.mxu0 %v1748_v44  ;;  %965 = vmatprep.mubr.bf16.mxu0 %v1877_v5 }
  0x34   : > { %1006 = vmatprep.mubr.bf16.mxu1 %v1877_v5  ;;  %v1038_v5 = vsub.s32 %v1035_v60, %v1037_v61 }
  0x35   : > { %987 = vmatpush1.bf16.msra.mxu1 %v1749_v51 }
  0x36   : > { %946 = vmatpush1.bf16.msra.mxu0 %v1747_v50  ;;  %988 = vmatprep.subr.bf16.mxu1 %v1742_v53 }
  0x37   : > { %947 = vmatprep.subr.bf16.mxu0 %v1740_v52 }
  0x39   : > { %989 = vmatpush1.bf16.msra.mxu1 %v1741_v55 }
  0x3a   : > { %948 = vmatpush1.bf16.msra.mxu0 %v1739_v54 }
  0x3c   : > { %1766 = vmatmul.mubr.msk.bf16.vlgmr.msra.gmra.mxu1 %vm822_vm1, %v695_v41 }
  0x3d   : > { %1764 = vmatmul.mubr.msk.bf16.vlgmr.msra.gmra.mxu0 %vm822_vm1, %v695_v41 }
  0x9f   : > { %v720_v59 = vpop.permute.xlu0 %719 }
  0xf0   : > { %v926_v63 = vpop.f32.mrf.mxu1 }
  0xf1   : > { %v885_v62 = vpop.f32.mrf.mxu0  ;;  %v927_v1 = vadd.f32 %v926_v63, %v720_v59 }
  0xf2   : > { %v886_v0 = vadd.f32 %v885_v62, %v720_v59  ;;  %v928_v3 = vpop.f32.mrf.mxu1 }
  0xf3   : > { %v887_v2 = vpop.f32.mrf.mxu0  ;;  %v929_v6 = vadd.f32 %v928_v3, %v720_v59 }
  0xf4   : > { %v888_v4 = vadd.f32 %v887_v2, %v720_v59  ;;  %v930_v8 = vpop.f32.mrf.mxu1 }
  0xf5   : > { %v889_v7 = vpop.f32.mrf.mxu0  ;;  %v1768_v10 = vpack.c.bf16 %v929_v6, %v927_v1 }
  0xf6   : > { %v1767_v9 = vpack.c.bf16 %v888_v4, %v886_v0  ;;  %v931_v12 = vpop.f32.mrf.mxu1 }
  0xf7   : > { %v890_v11 = vpop.f32.mrf.mxu0  ;;  %v1046_v14 = vrot.slane %v1768_v10, %v1038_v5 }
  0xf8   : > { %v1039_v13 = vrot.slane %v1767_v9, %v1038_v5 }
  0xfa   : > { %v1047_v15 = vcombine.low %v1039_v13, %v1046_v14 }
  0xfc   : > { %1067 = vst [vmem:[%s687_s11] sm:$0xff] %v1047_v15  ;;  %v1008_v17 = vpop.f32.mrf.mxu1 }
  0xfd   : > { %v967_v16 = vpop.f32.mrf.mxu0 }
  0xfe   : > { %v1010_v19 = vpop.f32.mrf.mxu1 }
  0xff   : > { %v969_v18 = vpop.f32.mrf.mxu0  ;;  %1075 = sbr.rel (!%p1934_p6) target bundleno = 261 (0x105), region = 102 }
 0x100   : > { %v1012_v21 = vpop.f32.mrf.mxu1 }
 0x101   : > { %v971_v20 = vpop.f32.mrf.mxu0 }
 0x102   : > { %v1013_v23 = vpop.f32.mrf.mxu1 }
 0x103   : > { %v972_v22 = vpop.f32.mrf.mxu0  ;;  %v1104_v24 = vld [vmem:[%s687_s11] sm:$0x3] (%p1934_p6) }
 0x104   : > { %1105 = vst [vmem:[%s1082_s20] sm:$0x3] %v1104_v24 }
 0x105 PF: > { %s13_s16 = sadd.s32 1, %s1875_s16   ;;  %s2025_s12 = smov %s1863_s13 }
 0x106   : > { %p10_p11 = scmp.ge.s32.totalorder %s13_s16, 4   ;;  %s2026_s13 = smov %s1939_s22 }
 0x107   : > { %s2027_s14 = smov %s1871_s15  ;;  %s2028_s15 = smov %s2030_s17 }
 0x108   :  { %12 = sbr.rel (!%p10_p11) target bundleno = 3 (0x3), region = 323 }

// kernel: esa_forward.18
= control target key start
LH: loop header
LB: loop body
LE: loop exit
PB: predicated region body
PF: predicated region fallthrough
CT: control target
= control target key end

     0   :  { %s1234_s12 = smov 0   ;;  %s1361_s0 = inlined_call_operand.vmem [shape: bf16[2,4,3,3], index: 0, kind: input, shape index: {}]   ;;  %s1362_s1 = inlined_call_operand.vmem [shape: f32[32,3], index: 1, kind: input, shape index: {}, may-alias: {1,2}]   ;;  %s1363_s2 = inlined_call_operand.vmem [shape: f32[32,3], index: 2, kind: input, shape index: {}, may-alias: {1,2}]   ;;  %s1364_s3 = inlined_call_operand.vmem [shape: bf16[2,4,32,32], index: 3, kind: output, shape index: {}]  }
   0x1 LB: > { %s993_s13 = sadd.s32 4294967295, %s1210_s12   ;;  %p997_p0 = scmp.ge.s32.totalorder %s1210_s12, 1  ;;  %s1210_s12 = sphi %s1234_s12, %s13_s12  }
   0x2   : > { %p137_p1 = scmp.lt.s32.totalorder %s1210_s12, 3 }
   0x4   : > { %p138_p2 = pnand %p997_p0, %p137_p1 }
   0x5   : > { %p161_p3 = scmp.lt.s32.totalorder (!%p138_p2), %s993_s13, 1 }
   0x6   : > { %141 = sbr.rel (%p138_p2) target bundleno = 441 (0x1b9), region = 32 }
   0xb   : > { %v186_v0 = vld [vmem:[%s1363_s2 + $0x18] sm:$0xff]  ;;  %vm187_vm0 = vcmask 23552   ;;  %v1212_v1 = vmov 0.0   ;;  %v185_v2 = vld [vmem:[%s1363_s2 + $0x10] sm:$0xff]  ;;  %s1366_s13 = smov (!%p161_p3, %s993_s13), 1  ;;  %vm1213_vm1 = vmmov 0  }
   0xc   : > { %1118 = vmatprep.subr.mxu0 %v1212_v1  ;;  %1129 = vmatprep.subr.mxu1 %v1212_v1  ;;  %s1060_s18 = sshll.u32 %s1366_s13, 3  ;;  %v184_v3 = vld [vmem:[%s1363_s2 + $0x8] sm:$0xff]  ;;  %v183_v6 = vld [vmem:[%s1363_s2] sm:$0xff]  ;;  %vm504_vm2 = vcmask 1042432   ;;  %v181_v17 = vld [vmem:[%s1362_s1 + $0x10] sm:$0xff]  ;;  %s1061_s7 = sshll.u32 %s1366_s13, 6 }
   0xd   : > { %1119 = vmatpush3.xpose.msk.msra.mxu0 %vm187_vm0, %v186_v0  ;;  %1130 = vmatpush3.xpose.msk.msra.mxu1 %vm187_vm0, %v186_v0  ;;  %s165_s23 = scalar_lea.vmem %s1361_s0, %s1060_s18  ;;  %v179_v13 = vld [vmem:[%s1362_s1] sm:$0xff]  ;;  %v180_v16 = vld [vmem:[%s1362_s1 + $0x8] sm:$0xff]  ;;  %v182_v20 = vld [vmem:[%s1362_s1 + $0x18] sm:$0xff]  ;;  %s1324_s10 = scalar_lea.vmem %s1364_s3, %s1061_s7  ;;  %vm921_vm3 = vcmask 257024  }
   0xe   : > { %1120 = vmatprep.subr.mxu0 %v1212_v1  ;;  %1131 = vmatprep.subr.mxu1 %v1212_v1  ;;  %v171_v4 = vld [vmem:[%s165_s23] sm:$0x3]  ;;  %v172_v5 = vld [vmem:[%s165_s23 + $0x2] sm:$0x3]  ;;  %v173_v9 = vld [vmem:[%s165_s23 + $0x4] sm:$0x3] }
   0xf   : > { %1126 = vmatprep.mubr.msk.f32.mxu0 %vm1213_vm1, %v1212_v1  ;;  %1137 = vmatprep.mubr.msk.f32.mxu1 %vm1213_vm1, %v1212_v1  ;;  %v175_v7 = vunpack.c.l.bf16 %v171_v4  ;;  %v176_v8 = vunpack.c.l.bf16 %v172_v5  ;;  %v174_v10 = vld [vmem:[%s165_s23 + $0x6] sm:$0x3]  ;;  %v177_v11 = vunpack.c.l.bf16 %v173_v9 }
  0x10   : > { %v178_v12 = vunpack.c.l.bf16 %v174_v10 }
  0x11   : > { %1121 = vmatpush3.xpose.msk.msra.mxu0 %vm187_vm0, %v185_v2  ;;  %1132 = vmatpush3.xpose.msk.msra.mxu1 %vm187_vm0, %v185_v2 }
  0x12   : > { %1122 = vmatprep.subr.mxu0 %v1212_v1  ;;  %1133 = vmatprep.subr.mxu1 %v1212_v1 }
  0x15   : > { %1123 = vmatpush3.xpose.msk.msra.mxu0 %vm187_vm0, %v184_v3  ;;  %1134 = vmatpush3.xpose.msk.msra.mxu1 %vm187_vm0, %v184_v3 }
  0x16   : > { %1124 = vmatprep.subr.mxu0 %v1212_v1  ;;  %1135 = vmatprep.subr.mxu1 %v1212_v1 }
  0x19   : > { %1125 = vmatpush3.xpose.msk.msra.mxu0 %vm187_vm0, %v183_v6  ;;  %1136 = vmatpush3.xpose.msk.msra.mxu1 %vm187_vm0, %v183_v6 }
  0x1a   : > { %1140 = vmatprep.subr.mxu0 %v1212_v1  ;;  %1151 = vmatprep.subr.mxu1 %v1212_v1 }
  0x1c   : > { %1127 = vmatmul.mubr.msk.f32.vlgmr.msra.gmra.mxu0 %vm187_vm0, %v175_v7  ;;  %1138 = vmatmul.mubr.msk.f32.vlgmr.msra.gmra.mxu1 %vm187_vm0, %v176_v8 }
  0x1d   : > { %1141 = vmatpush3.xpose.msk.msra.mxu0 %vm187_vm0, %v186_v0  ;;  %1152 = vmatpush3.xpose.msk.msra.mxu1 %vm187_vm0, %v186_v0 }
  0x1e   : > { %1142 = vmatprep.subr.mxu0 %v1212_v1  ;;  %1153 = vmatprep.subr.mxu1 %v1212_v1 }
  0x1f   : > { %1148 = vmatprep.mubr.msk.f32.mxu0 %vm1213_vm1, %v1212_v1  ;;  %1159 = vmatprep.mubr.msk.f32.mxu1 %vm1213_vm1, %v1212_v1 }
  0x21   : > { %1143 = vmatpush3.xpose.msk.msra.mxu0 %vm187_vm0, %v185_v2  ;;  %1154 = vmatpush3.xpose.msk.msra.mxu1 %vm187_vm0, %v185_v2 }
  0x22   : > { %1144 = vmatprep.subr.mxu0 %v1212_v1  ;;  %1155 = vmatprep.subr.mxu1 %v1212_v1 }
  0x25   : > { %1145 = vmatpush3.xpose.msk.msra.mxu0 %vm187_vm0, %v184_v3  ;;  %1156 = vmatpush3.xpose.msk.msra.mxu1 %vm187_vm0, %v184_v3 }
  0x26   : > { %1146 = vmatprep.subr.mxu0 %v1212_v1  ;;  %1157 = vmatprep.subr.mxu1 %v1212_v1 }
  0x29   : > { %1147 = vmatpush3.xpose.msk.msra.mxu0 %vm187_vm0, %v183_v6  ;;  %1158 = vmatpush3.xpose.msk.msra.mxu1 %vm187_vm0, %v183_v6 }
  0x2c   : > { %1149 = vmatmul.mubr.msk.f32.vlgmr.msra.gmra.mxu0 %vm187_vm0, %v177_v11  ;;  %1160 = vmatmul.mubr.msk.f32.vlgmr.msra.gmra.mxu1 %vm187_vm0, %v178_v12 }
  0x2d   : > { %1164 = vmatprep.mubr.msk.f32.mxu0 %vm187_vm0, %v179_v13  ;;  %1172 = vmatprep.mubr.msk.f32.mxu1 %vm187_vm0, %v179_v13 }
  0xdc   : > { %v269_v14 = vpop.f32.mrf.mxu0  ;;  %v342_v15 = vpop.f32.mrf.mxu1 }
  0xdd   : > { %1162 = vmatprep.subr.msk.mxu0 %vm504_vm2, %v269_v14  ;;  %1170 = vmatprep.subr.msk.mxu1 %vm504_vm2, %v342_v15 }
  0xde   : > { %v1128_v18 = vpop.f32.mrf.mxu0  ;;  %v1139_v19 = vpop.f32.mrf.mxu1  ;;  %1163 = vmatpush3.msk.msra.mxu0 %vm504_vm2, %v269_v14  ;;  %1171 = vmatpush3.msk.msra.mxu1 %vm504_vm2, %v342_v15 }
  0xdf   : > { %1165 = vmatmul.mubr.msk.f32.vlgmr.msra.gmra.mxu0 %vm187_vm0, %v180_v16  ;;  %1173 = vmatmul.mubr.msk.f32.vlgmr.msra.gmra.mxu1 %vm187_vm0, %v180_v16 }
  0xe0   : > { %1167 = vmatprep.mubr.msk.f32.mxu0 %vm187_vm0, %v181_v17  ;;  %1175 = vmatprep.mubr.msk.f32.mxu1 %vm187_vm0, %v181_v17 }
  0xe3   : > { %1168 = vmatmul.mubr.msk.f32.gmra.mxu0 %vm187_vm0, %v182_v20  ;;  %1176 = vmatmul.mubr.msk.f32.gmra.mxu1 %vm187_vm0, %v182_v20 }
  0xe4   : > { %1180 = vmatprep.mubr.msk.f32.mxu0 %vm187_vm0, %v179_v13  ;;  %1188 = vmatprep.mubr.msk.f32.mxu1 %vm187_vm0, %v179_v13 }
  0xec   : > { %v415_v21 = vpop.f32.mrf.mxu0  ;;  %v488_v22 = vpop.f32.mrf.mxu1 }
  0xed   : > { %1178 = vmatprep.subr.msk.mxu0 %vm504_vm2, %v415_v21  ;;  %1186 = vmatprep.subr.msk.mxu1 %vm504_vm2, %v488_v22 }
  0xee   : > { %v1150_v23 = vpop.f32.mrf.mxu0  ;;  %v1161_v24 = vpop.f32.mrf.mxu1  ;;  %1179 = vmatpush3.msk.msra.mxu0 %vm504_vm2, %v415_v21  ;;  %1187 = vmatpush3.msk.msra.mxu1 %vm504_vm2, %v488_v22 }
  0xef   : > { %1181 = vmatmul.mubr.msk.f32.vlgmr.msra.gmra.mxu0 %vm187_vm0, %v180_v16  ;;  %1189 = vmatmul.mubr.msk.f32.vlgmr.msra.gmra.mxu1 %vm187_vm0, %v180_v16 }
  0xf0   : > { %1183 = vmatprep.mubr.msk.f32.mxu0 %vm187_vm0, %v181_v17  ;;  %1191 = vmatprep.mubr.msk.f32.mxu1 %vm187_vm0, %v181_v17 }
  0xf3   : > { %1184 = vmatmul.mubr.msk.f32.gmra.mxu0 %vm187_vm0, %v182_v20  ;;  %1192 = vmatmul.mubr.msk.f32.gmra.mxu1 %vm187_vm0, %v182_v20 }
 0x19f   : > { %v1166_v25 = vpop.f32.mrf.mxu0  ;;  %v1174_v26 = vpop.f32.mrf.mxu1 }
 0x1a0   : > { %v1063_v27 = vpack.c.bf16 %v1166_v25, %v1166_v25  ;;  %v1067_v28 = vpack.c.bf16 %v1174_v26, %v1174_v26 }
 0x1a1   : > { %v574_v29 = vpop.f32.mrf.mxu0  ;;  %v662_v30 = vpop.f32.mrf.mxu1 }
 0x1a2   : > { %923 = vst.msk [vmem:[%s1324_s10 + $0x4] sm:$0xf] %vm921_vm3, %v1063_v27  ;;  %927 = vst.msk [vmem:[%s1324_s10 + $0x14] sm:$0xf] %vm921_vm3, %v1067_v28  ;;  %v1062_v31 = vpack.c.bf16 %v574_v29, %v574_v29  ;;  %v1066_v32 = vpack.c.bf16 %v662_v30, %v662_v30 }
 0x1a3   : > { %v1169_v33 = vpop.f32.mrf.mxu0  ;;  %v1177_v34 = vpop.f32.mrf.mxu1 }
 0x1a4   : > { %922 = vst.msk [vmem:[%s1324_s10] sm:$0xf] %vm921_vm3, %v1062_v31  ;;  %926 = vst.msk [vmem:[%s1324_s10 + $0x10] sm:$0xf] %vm921_vm3, %v1066_v32  ;;  %v1065_v35 = vpack.c.bf16 %v1169_v33, %v1169_v33  ;;  %v1069_v36 = vpack.c.bf16 %v1177_v34, %v1177_v34 }
 0x1a5   : > { %v584_v37 = vpop.f32.mrf.mxu0  ;;  %v672_v38 = vpop.f32.mrf.mxu1 }
 0x1a6   : > { %925 = vst.msk [vmem:[%s1324_s10 + $0xc] sm:$0xf] %vm921_vm3, %v1065_v35  ;;  %929 = vst.msk [vmem:[%s1324_s10 + $0x1c] sm:$0xf] %vm921_vm3, %v1069_v36  ;;  %v1064_v39 = vpack.c.bf16 %v584_v37, %v584_v37  ;;  %v1068_v40 = vpack.c.bf16 %v672_v38, %v672_v38 }
 0x1a8   : > { %924 = vst.msk [vmem:[%s1324_s10 + $0x8] sm:$0xf] %vm921_vm3, %v1064_v39  ;;  %928 = vst.msk [vmem:[%s1324_s10 + $0x18] sm:$0xf] %vm921_vm3, %v1068_v40 }
 0x1af   : > { %v1182_v41 = vpop.f32.mrf.mxu0  ;;  %v1190_v42 = vpop.f32.mrf.mxu1 }
 0x1b0   : > { %v1071_v43 = vpack.c.bf16 %v1182_v41, %v1182_v41  ;;  %v1075_v44 = vpack.c.bf16 %v1190_v42, %v1190_v42 }
 0x1b1   : > { %v750_v45 = vpop.f32.mrf.mxu0  ;;  %v838_v46 = vpop.f32.mrf.mxu1 }
 0x1b2   : > { %931 = vst.msk [vmem:[%s1324_s10 + $0x24] sm:$0xf] %vm921_vm3, %v1071_v43  ;;  %935 = vst.msk [vmem:[%s1324_s10 + $0x34] sm:$0xf] %vm921_vm3, %v1075_v44  ;;  %v1070_v47 = vpack.c.bf16 %v750_v45, %v750_v45  ;;  %v1074_v48 = vpack.c.bf16 %v838_v46, %v838_v46 }
 0x1b3   : > { %v1185_v49 = vpop.f32.mrf.mxu0  ;;  %v1193_v50 = vpop.f32.mrf.mxu1 }
 0x1b4   : > { %930 = vst.msk [vmem:[%s1324_s10 + $0x20] sm:$0xf] %vm921_vm3, %v1070_v47  ;;  %934 = vst.msk [vmem:[%s1324_s10 + $0x30] sm:$0xf] %vm921_vm3, %v1074_v48  ;;  %v1073_v51 = vpack.c.bf16 %v1185_v49, %v1185_v49  ;;  %v1077_v52 = vpack.c.bf16 %v1193_v50, %v1193_v50 }
 0x1b5   : > { %v760_v53 = vpop.f32.mrf.mxu0  ;;  %v848_v54 = vpop.f32.mrf.mxu1 }
 0x1b6   : > { %933 = vst.msk [vmem:[%s1324_s10 + $0x2c] sm:$0xf] %vm921_vm3, %v1073_v51  ;;  %937 = vst.msk [vmem:[%s1324_s10 + $0x3c] sm:$0xf] %vm921_vm3, %v1077_v52  ;;  %v1072_v55 = vpack.c.bf16 %v760_v53, %v760_v53  ;;  %v1076_v56 = vpack.c.bf16 %v848_v54, %v848_v54 }
 0x1b8   : > { %932 = vst.msk [vmem:[%s1324_s10 + $0x28] sm:$0xf] %vm921_vm3, %v1072_v55  ;;  %936 = vst.msk [vmem:[%s1324_s10 + $0x38] sm:$0xf] %vm921_vm3, %v1076_v56 }
 0x1b9 PF: > { %s13_s12 = sadd.s32 1, %s1210_s12  }
 0x1ba   : > { %p10_p4 = scmp.ge.s32.totalorder %s13_s12, 4  }
 0x1bc   :  { %12 = sbr.rel (!%p10_p4) target bundleno = 1 (0x1), region = 62 }

// kernel: esa_forward.11
= control target key start
LH: loop header
LB: loop body
LE: loop exit
PB: predicated region body
PF: predicated region fallthrough
CT: control target
= control target key end

     0   :  { %s690_s12 = smov 0   ;;  %s692_s13 = smov 0   ;;  %s754_s0 = inlined_call_operand.vmem [shape: bf16[4,4], index: 0, kind: input, shape index: {}]   ;;  %s755_s1 = inlined_call_operand.vmem [shape: f32[4,1], index: 1, kind: input, shape index: {}]   ;;  %s756_s2 = inlined_call_operand.vmem [shape: bf16[2,4,1024], index: 2, kind: input, shape index: {}]   ;;  %s757_s3 = inlined_call_operand.vmem [shape: bf16[2,4,1024], index: 3, kind: output, shape index: {}]  }
   0x1   :  { %s694_s14 = smov 0  }
   0x2 LB: > { %s25_s15 = sadd.s32 1, %s662_s13  ;;  %p594_p0 = scmp.ge.s32.totalorder %s666_s14, 1  ;;  %s666_s14 = sphi %s694_s14, %s13_s14   ;;  %s662_s13 = sphi %s692_s13, %s759_s13   ;;  %s658_s12 = sphi %s690_s12, %s758_s12  }
   0x3   : > { %p27_p1 = scmp.ge.s32.totalorder %s25_s15, 2  ;;  %p158_p2 = scmp.lt.s32.totalorder %s666_s14, 3 }
   0x5   : > { %s761_s15 = smov (%p27_p1, %s25_s15), 0  ;;  %p159_p3 = pnand %p594_p0, %p158_p2 }
   0x6   : > { %p191_p4 = scmp.lt.s32.totalorder (!%p159_p3), %s658_s12, 1 }
   0x7   : > { %162 = sbr.rel (%p159_p3) target bundleno = 239 (0xef), region = 32 }
   0xc   : > { %v226_v0 = vlaneseq  ;;  %v668_v1 = vmov 1983009808   ;;  %v669_v3 = vmov 0   ;;  %v214_v4 = vld [vmem:[%s755_s1] sm:$0xf]  ;;  %s763_s12 = smov (!%p191_p4, %s658_s12), 1 }
   0xd   : > { %v224_v2 = vunpack.c.l.s4 %v668_v1  ;;  %317 = vmatprep.mubr.bf16.mxu0 %v669_v3  ;;  %358 = vmatprep.mubr.bf16.mxu1 %v669_v3  ;;  %s613_s18 = sshll.u32 %s763_s12, 4  ;;  %vm260_vm0 = vcmask 1041408   ;;  %v211_v21 = vld [vmem:[%s754_s0] sm:$0x3]  ;;  %vm256_vm1 = vcmask 31744  }
   0xe   : > { %v227_v5 = vshrl.u32 %v226_v0, 7  ;;  %641 = vset.pattern.permute.xlu0 %v669_v3  ;;  %s198_s21 = scalar_lea.vmem %s756_s2, %s613_s18  ;;  %s208_s26 = scalar_lea.vmem %s757_s3, %s613_s18 }
   0xf   : > { %v225_v6 = vunpack.c.0.s8 %v224_v2  ;;  %217 = vperm.xlu0 %641, %v214_v4   ;;  %v212_v8 = vld [vmem:[%s198_s21] sm:$0xff]  ;;  %v213_v9 = vld [vmem:[%s198_s21 + $0x8] sm:$0xff] }
  0x10   : > { %v239_v11 = vcombine.high %v213_v9, %v213_v9  ;;  %v222_v13 = vcombine.high %v212_v8, %v212_v8 }
  0x11   : > { %v719_v7 = vsub.s32 %v225_v6, %v227_v5 }
  0x13   : > { %v229_v10 = vrot.slane %v212_v8, %v719_v7  ;;  %v246_v12 = vrot.slane %v213_v9, %v719_v7  ;;  %v236_v16 = vrot.slane %v222_v13, %v719_v7  ;;  %v253_v18 = vrot.slane %v239_v11, %v719_v7 }
  0x15   : > { %v237_v14 = vcombine.high %v229_v10, %v229_v10  ;;  %v262_v15 = vsel %vm260_vm0, %v229_v10, 0  ;;  %v254_v17 = vcombine.high %v246_v12, %v246_v12  ;;  %v238_v19 = vcombine.high %v236_v16, %v236_v16 }
  0x16   : > { %v268_v20 = vsel %vm260_vm0, %v236_v16, 0  ;;  %v255_v22 = vcombine.high %v253_v18, %v253_v18  ;;  %v274_v23 = vsel %vm260_vm0, %v246_v12, 0  ;;  %v280_v24 = vsel %vm260_vm0, %v253_v18, 0 }
  0x17   : > { %599 = vmatprep.subr.msk.bf16.mxu0 %vm260_vm0, %v237_v14  ;;  %601 = vmatprep.subr.msk.bf16.mxu1 %vm260_vm0, %v238_v19 }
  0x18   : > { %300 = vmatpush1.bf16.msra.mxu0 %v262_v15  ;;  %341 = vmatpush1.bf16.msra.mxu1 %v268_v20 }
  0x19   : > { %603 = vmatprep.subr.msk.bf16.mxu0 %vm260_vm0, %v254_v17  ;;  %605 = vmatprep.subr.msk.bf16.mxu1 %vm260_vm0, %v255_v22 }
  0x1b   : > { %600 = vmatmul.mubr.msk.bf16.vlgmr.msra.gmra.mxu0 %vm256_vm1, %v211_v21  ;;  %602 = vmatmul.mubr.msk.bf16.vlgmr.msra.gmra.mxu1 %vm256_vm1, %v211_v21 }
  0x1c   : > { %382 = vmatpush1.bf16.msra.mxu0 %v274_v23  ;;  %399 = vmatprep.mubr.bf16.mxu0 %v669_v3 }
  0x1d   : > { %423 = vmatpush1.bf16.msra.mxu1 %v280_v24  ;;  %440 = vmatprep.mubr.bf16.mxu1 %v669_v3 }
  0x23   : > { %604 = vmatmul.mubr.msk.bf16.vlgmr.msra.gmra.mxu0 %vm256_vm1, %v211_v21  ;;  %606 = vmatmul.mubr.msk.bf16.vlgmr.msra.gmra.mxu1 %vm256_vm1, %v211_v21 }
  0x8a   : > { %v218_v25 = vpop.permute.xlu0 %217 }
  0xdb   : > { %v319_v26 = vpop.f32.mrf.mxu0  ;;  %v360_v29 = vpop.f32.mrf.mxu1 }
  0xdc   : > { %v320_v27 = vadd.f32 %v319_v26, %v218_v25  ;;  %v361_v33 = vadd.f32 %v360_v29, %v218_v25 }
  0xdd   : > { %v321_v28 = vpop.f32.mrf.mxu0  ;;  %v362_v32 = vpop.f32.mrf.mxu1 }
  0xde   : > { %v322_v30 = vadd.f32 %v321_v28, %v218_v25  ;;  %v363_v34 = vadd.f32 %v362_v32, %v218_v25 }
  0xdf   : > { %v323_v31 = vpop.f32.mrf.mxu0  ;;  %v364_v37 = vpop.f32.mrf.mxu1 }
  0xe0   : > { %v607_v35 = vpack.c.bf16 %v322_v30, %v320_v27  ;;  %v608_v38 = vpack.c.bf16 %v363_v34, %v361_v33 }
  0xe1   : > { %v324_v36 = vpop.f32.mrf.mxu0  ;;  %v365_v39 = vpop.f32.mrf.mxu1 }
  0xe2   : > { %v473_v41 = vrot.slane %v607_v35, %v719_v7  ;;  %v480_v42 = vrot.slane %v608_v38, %v719_v7 }
  0xe3   : > { %v401_v40 = vpop.f32.mrf.mxu0  ;;  %v442_v45 = vpop.f32.mrf.mxu1 }
  0xe4   : > { %v402_v43 = vadd.f32 %v401_v40, %v218_v25  ;;  %v481_v46 = vcombine.low %v473_v41, %v480_v42  ;;  %v443_v51 = vadd.f32 %v442_v45, %v218_v25 }
  0xe5   : > { %v403_v44 = vpop.f32.mrf.mxu0  ;;  %v444_v49 = vpop.f32.mrf.mxu1 }
  0xe6   : > { %v404_v47 = vadd.f32 %v403_v44, %v218_v25  ;;  %501 = vst [vmem:[%s208_s26] sm:$0xff] %v481_v46  ;;  %v445_v52 = vadd.f32 %v444_v49, %v218_v25 }
  0xe7   : > { %v405_v48 = vpop.f32.mrf.mxu0  ;;  %v446_v54 = vpop.f32.mrf.mxu1 }
  0xe8   : > { %v609_v50 = vpack.c.bf16 %v404_v47, %v402_v43  ;;  %v610_v55 = vpack.c.bf16 %v445_v52, %v443_v51 }
  0xe9   : > { %v406_v53 = vpop.f32.mrf.mxu0  ;;  %v447_v56 = vpop.f32.mrf.mxu1 }
  0xea   : > { %v490_v57 = vrot.slane %v609_v50, %v719_v7  ;;  %v497_v58 = vrot.slane %v610_v55, %v719_v7 }
  0xec   : > { %v498_v59 = vcombine.low %v490_v57, %v497_v58 }
  0xee   : > { %502 = vst [vmem:[%s208_s26 + $0x8] sm:$0xff] %v498_v59 }
  0xef PF: > { %s13_s14 = sadd.s32 1, %s666_s14   ;;  %s758_s12 = smov %s662_s13 }
  0xf0   : > { %p10_p5 = scmp.ge.s32.totalorder %s13_s14, 4   ;;  %s759_s13 = smov %s761_s15 }
  0xf2   :  { %12 = sbr.rel (!%p10_p5) target bundleno = 2 (0x2), region = 62 }

// kernel: esa_forward.19
= control target key start
LH: loop header
LB: loop body
LE: loop exit
PB: predicated region body
PF: predicated region fallthrough
CT: control target
= control target key end

     0   :  { %s1316_s18 = smov 0   ;;  %s1318_s19 = smov 0   ;;  %s1463_s0 = inlined_call_operand.vmem [shape: bf16[16,4], index: 0, kind: input, shape index: {}]   ;;  %s1464_s1 = inlined_call_operand.vmem [shape: f32[16,1], index: 1, kind: input, shape index: {}]   ;;  %s1465_s2 = inlined_call_operand.vmem [shape: bf16[2,4,1024], index: 2, kind: input, shape index: {}]   ;;  %s1466_s3 = inlined_call_operand.vmem [shape: bf16[2,4,1024], index: 3, kind: input, shape index: {}]   ;;  %s1467_s4 = inlined_call_operand.vmem [shape: f32[2,16,1024], index: 4, kind: input, shape index: {}]   ;;  %s1468_s5 = inlined_call_operand.vmem [shape: f32[2,16,1024], index: 5, kind: output, shape index: {}]  }
   0x1   :  { %s1320_s20 = smov 0  }
   0x2 LB: > { %s27_s21 = sadd.s32 1, %s1278_s19  ;;  %p1116_p0 = scmp.ge.s32.totalorder %s1282_s20, 1  ;;  %s1282_s20 = sphi %s1320_s20, %s15_s20   ;;  %s1278_s19 = sphi %s1318_s19, %s1470_s19   ;;  %s1274_s18 = sphi %s1316_s18, %s1469_s18  }
   0x3   : > { %p29_p1 = scmp.ge.s32.totalorder %s27_s21, 2  ;;  %p242_p2 = scmp.lt.s32.totalorder %s1282_s20, 3 }
   0x5   : > { %s1472_s21 = smov (%p29_p1, %s27_s21), 0  ;;  %p243_p3 = pnand %p1116_p0, %p242_p2 }
   0x6   : > { %p297_p4 = scmp.lt.s32.totalorder (!%p243_p3), %s1274_s18, 1 }
   0x7   : > { %246 = sbr.rel (%p243_p3) target bundleno = 297 (0x129), region = 40 }
   0xc   : > { %v354_v0 = vlaneseq  ;;  %v1284_v1 = vmov 1983009808   ;;  %v1285_v3 = vmov 0   ;;  %v817_v4 = vld [vmem:[%s1464_s1] sm:$0xff]  ;;  %s1474_s18 = smov (!%p297_p4, %s1274_s18), 1  ;;  %v818_v7 = vld [vmem:[%s1464_s1 + $0x8] sm:$0xff] }
   0xd   : > { %v352_v2 = vunpack.c.l.s4 %v1284_v1  ;;  %445 = vmatprep.mubr.bf16.mxu0 %v1285_v3  ;;  %488 = vmatprep.mubr.bf16.mxu1 %v1285_v3  ;;  %s1160_s24 = sshll.u32 %s1474_s18, 4  ;;  %vm388_vm0 = vcmask 1041408   ;;  %v1195_v25 = vld [vmem:[%s1463_s0] sm:$0xff]   ;;  %vm384_vm1 = vcmask 31744   ;;  %s1162_s10 = sshll.u32 %s1474_s18, 7 }
   0xe   : > { %v355_v5 = vshrl.u32 %v354_v0, 7  ;;  %1190 = vset.pattern.permute.xlu0 %v1285_v3  ;;  %s304_s29 = scalar_lea.vmem %s1465_s2, %s1160_s24  ;;  %s314_s7 = scalar_lea.vmem %s1466_s3, %s1160_s24 }
   0xf   : > { %v353_v6 = vunpack.c.0.s8 %v352_v2  ;;  %821 = vperm.xlu0 %1190, %v817_v4   ;;  %v339_v9 = vld [vmem:[%s304_s29] sm:$0xff]  ;;  %v342_v11 = vld [vmem:[%s314_s7 + $0x8] sm:$0xff]  ;;  %s1415_s13 = scalar_lea.vmem %s1467_s4, %s1162_s10  ;;  %s1421_s16 = scalar_lea.vmem %s1468_s5, %s1162_s10 }
  0x10   : > { %v341_v10 = vld [vmem:[%s314_s7] sm:$0xff]  ;;  %v587_v13 = vcombine.high %v339_v9, %v339_v9  ;;  %v367_v15 = vcombine.high %v342_v11, %v342_v11  ;;  %v340_v27 = vld [vmem:[%s304_s29 + $0x8] sm:$0xff] }
  0x11   : > { %v356_v8 = vsub.s32 %v353_v6, %v355_v5  ;;  %v350_v14 = vcombine.high %v341_v10, %v341_v10  ;;  %v604_v31 = vcombine.high %v340_v27, %v340_v27 }
  0x13   : > { %v357_v12 = vrot.slane %v341_v10, %v356_v8  ;;  %826 = vperm.xlu0 %1190, %v818_v7   ;;  %v374_v16 = vrot.slane %v342_v11, %v356_v8  ;;  %v364_v19 = vrot.slane %v350_v14, %v356_v8  ;;  %v594_v20 = vrot.slane %v339_v9, %v356_v8 }
  0x14   : > { %v381_v22 = vrot.slane %v367_v15, %v356_v8  ;;  %v601_v26 = vrot.slane %v587_v13, %v356_v8  ;;  %v611_v34 = vrot.slane %v340_v27, %v356_v8  ;;  %v618_v35 = vrot.slane %v604_v31, %v356_v8 }
  0x15   : > { %v365_v17 = vcombine.high %v357_v12, %v357_v12  ;;  %v390_v18 = vsel %vm388_vm0, %v357_v12, 0  ;;  %v382_v21 = vcombine.high %v374_v16, %v374_v16  ;;  %v366_v23 = vcombine.high %v364_v19, %v364_v19 }
  0x16   : > { %v396_v24 = vsel %vm388_vm0, %v364_v19, 0  ;;  %v383_v28 = vcombine.high %v381_v22, %v381_v22  ;;  %v402_v29 = vsel %vm388_vm0, %v374_v16, 0  ;;  %v602_v30 = vcombine.high %v594_v20, %v594_v20 }
  0x17   : > { %1126 = vmatprep.subr.msk.bf16.mxu0 %vm388_vm0, %v365_v17  ;;  %1128 = vmatprep.subr.msk.bf16.mxu1 %vm388_vm0, %v366_v23  ;;  %v408_v32 = vsel %vm388_vm0, %v381_v22, 0  ;;  %v603_v33 = vcombine.high %v601_v26, %v601_v26  ;;  %v622_v36 = vsel %vm388_vm0, %v594_v20, 0  ;;  %v619_v37 = vcombine.high %v611_v34, %v611_v34 }
  0x18   : > { %428 = vmatpush1.bf16.msra.mxu0 %v390_v18  ;;  %471 = vmatpush1.bf16.msra.mxu1 %v396_v24  ;;  %v628_v38 = vsel %vm388_vm0, %v601_v26, 0  ;;  %v620_v39 = vcombine.high %v618_v35, %v618_v35  ;;  %v634_v40 = vsel %vm388_vm0, %v611_v34, 0  ;;  %v640_v41 = vsel %vm388_vm0, %v618_v35, 0 }
  0x19   : > { %1130 = vmatprep.subr.msk.bf16.mxu0 %vm388_vm0, %v382_v21  ;;  %1132 = vmatprep.subr.msk.bf16.mxu1 %vm388_vm0, %v383_v28 }
  0x1b   : > { %1127 = vmatmul.mubr.msk.bf16.vlgmr.msra.gmra.mxu0 %vm384_vm1, %v1195_v25  ;;  %1129 = vmatmul.mubr.msk.bf16.vlgmr.msra.gmra.mxu1 %vm384_vm1, %v1195_v25 }
  0x1c   : > { %514 = vmatpush1.bf16.msra.mxu0 %v402_v29  ;;  %531 = vmatprep.mubr.bf16.mxu0 %v1285_v3 }
  0x1d   : > { %1134 = vmatprep.subr.msk.bf16.mxu0 %vm388_vm0, %v602_v30  ;;  %557 = vmatpush1.bf16.msra.mxu1 %v408_v32 }
  0x1e   : > { %574 = vmatprep.mubr.bf16.mxu1 %v1285_v3  ;;  %1136 = vmatprep.subr.msk.bf16.mxu1 %vm388_vm0, %v603_v33 }
  0x23   : > { %1131 = vmatmul.mubr.msk.bf16.vlgmr.msra.gmra.mxu0 %vm384_vm1, %v1195_v25  ;;  %1133 = vmatmul.mubr.msk.bf16.vlgmr.msra.gmra.mxu1 %vm384_vm1, %v1195_v25 }
  0x24   : > { %660 = vmatpush1.bf16.msra.mxu0 %v622_v36  ;;  %677 = vmatprep.mubr.bf16.mxu0 %v1285_v3 }
  0x25   : > { %1138 = vmatprep.subr.msk.bf16.mxu0 %vm388_vm0, %v619_v37  ;;  %703 = vmatpush1.bf16.msra.mxu1 %v628_v38 }
  0x26   : > { %720 = vmatprep.mubr.bf16.mxu1 %v1285_v3  ;;  %1140 = vmatprep.subr.msk.bf16.mxu1 %vm388_vm0, %v620_v39 }
  0x2b   : > { %1135 = vmatmul.mubr.msk.bf16.vlgmr.msra.gmra.mxu0 %vm384_vm1, %v1195_v25  ;;  %1137 = vmatmul.mubr.msk.bf16.vlgmr.msra.gmra.mxu1 %vm384_vm1, %v1195_v25 }
  0x2c   : > { %746 = vmatpush1.bf16.msra.mxu0 %v634_v40  ;;  %763 = vmatprep.mubr.bf16.mxu0 %v1285_v3 }
  0x2d   : > { %789 = vmatpush1.bf16.msra.mxu1 %v640_v41  ;;  %806 = vmatprep.mubr.bf16.mxu1 %v1285_v3 }
  0x33   : > { %1139 = vmatmul.mubr.msk.bf16.vlgmr.msra.gmra.mxu0 %vm384_vm1, %v1195_v25  ;;  %1141 = vmatmul.mubr.msk.bf16.vlgmr.msra.gmra.mxu1 %vm384_vm1, %v1195_v25 }
  0x8a   : > { %v1385_v55 = vpop.permute.xlu0 %821 }
  0x8e   : > { %v1392_v2 = vpop.permute.xlu0 %826 }
  0xdb   : > { %v447_v42 = vpop.f32.mrf.mxu0  ;;  %v490_v44 = vpop.f32.mrf.mxu1 }
  0xdd   : > { %v449_v43 = vpop.f32.mrf.mxu0  ;;  %v492_v46 = vpop.f32.mrf.mxu1 }
  0xdf   : > { %v451_v45 = vpop.f32.mrf.mxu0  ;;  %v494_v48 = vpop.f32.mrf.mxu1 }
  0xe1   : > { %v453_v47 = vpop.f32.mrf.mxu0  ;;  %v496_v49 = vpop.f32.mrf.mxu1 }
  0xe3   : > { %v533_v50 = vpop.f32.mrf.mxu0  ;;  %v576_v52 = vpop.f32.mrf.mxu1 }
  0xe5   : > { %v535_v51 = vpop.f32.mrf.mxu0  ;;  %v578_v54 = vpop.f32.mrf.mxu1 }
  0xe7   : > { %v537_v53 = vpop.f32.mrf.mxu0  ;;  %v1387_v57 = vpop.f32.mrf.mxu1 }
  0xe9   : > { %v539_v56 = vpop.f32.mrf.mxu0  ;;  %v1389_v58 = vpop.f32.mrf.mxu1 }
  0xeb   : > { %v679_v59 = vpop.f32.mrf.mxu0  ;;  %v722_v62 = vpop.f32.mrf.mxu1 }
  0xec   : > { %v680_v60 = vadd.f32 %v679_v59, %v447_v42  ;;  %v723_v1 = vadd.f32 %v722_v62, %v490_v44 }
  0xed   : > { %v681_v61 = vpop.f32.mrf.mxu0  ;;  %v724_v4 = vpop.f32.mrf.mxu1 }
  0xee   : > { %v829_v63 = vadd.f32 %v1385_v55, %v680_v60  ;;  %v682_v0 = vadd.f32 %v681_v61, %v449_v43  ;;  %v831_v7 = vadd.f32 %v1385_v55, %v723_v1  ;;  %v725_v9 = vadd.f32 %v724_v4, %v492_v46 }
  0xef   : > { %v683_v3 = vpop.f32.mrf.mxu0  ;;  %v726_v11 = vpop.f32.mrf.mxu1 }
  0xf0   : > { %v1142_v5 = vmul.f32 -1.442695, %v829_v63  ;;  %v830_v6 = vadd.f32 %v1385_v55, %v682_v0  ;;  %v684_v8 = vadd.f32 %v683_v3, %v451_v45  ;;  %v1144_v13 = vmul.f32 -1.442695, %v831_v7 }
  0xf1   : > { %v685_v10 = vpop.f32.mrf.mxu0  ;;  %v832_v15 = vadd.f32 %v1385_v55, %v725_v9  ;;  %v727_v17 = vadd.f32 %v726_v11, %v494_v48  ;;  %v728_v18 = vpop.f32.mrf.mxu1 }
  0xf2   : > { %1196 = vpow2.f32 %v1142_v5  ;;  %v1143_v12 = vmul.f32 -1.442695, %v830_v6  ;;  %v837_v14 = vadd.f32 %v1392_v2, %v684_v8  ;;  %v686_v16 = vadd.f32 %v685_v10, %v453_v47 }
  0xf3   : > { %v765_v19 = vpop.f32.mrf.mxu0  ;;  %v729_v21 = vadd.f32 %v728_v18, %v496_v49  ;;  %v1145_v23 = vmul.f32 -1.442695, %v832_v15  ;;  %v839_v25 = vadd.f32 %v1392_v2, %v727_v17  ;;  %v808_v27 = vpop.f32.mrf.mxu1 }
  0xf4   : > { %1198 = vpow2.f32 %v1143_v12  ;;  %v1150_v20 = vmul.f32 -1.442695, %v837_v14  ;;  %v766_v22 = vadd.f32 %v765_v19, %v533_v50  ;;  %v838_v24 = vadd.f32 %v1392_v2, %v686_v16 }
  0xf5   : > { %1200 = vpow2.f32 %v1144_v13  ;;  %v767_v26 = vpop.f32.mrf.mxu0  ;;  %v840_v28 = vadd.f32 %v1392_v2, %v729_v21  ;;  %v1152_v32 = vmul.f32 -1.442695, %v839_v25  ;;  %v809_v33 = vadd.f32 %v808_v27, %v576_v52  ;;  %v810_v35 = vpop.f32.mrf.mxu1  ;;  %v942_v25 = vld [vmem:[%s1415_s13 + $0x8] sm:$0xff] }
  0xf6   : > { %1202 = vpow2.f32 %v1150_v20  ;;  %v833_v29 = vadd.f32 %v1385_v55, %v766_v22  ;;  %v768_v30 = vadd.f32 %v767_v26, %v535_v51  ;;  %v1151_v31 = vmul.f32 -1.442695, %v838_v24  ;;  %v941_v20 = vld [vmem:[%s1415_s13] sm:$0xff] }
  0xf7   : > { %1204 = vpow2.f32 %v1145_v23  ;;  %v769_v34 = vpop.f32.mrf.mxu0  ;;  %v1153_v36 = vmul.f32 -1.442695, %v840_v28  ;;  %v835_v40 = vadd.f32 %v1385_v55, %v809_v33  ;;  %v811_v41 = vadd.f32 %v810_v35, %v578_v54  ;;  %v812_v43 = vpop.f32.mrf.mxu1  ;;  %v944_v35 = vld [vmem:[%s1415_s13 + $0x18] sm:$0xff] }
  0xf8   : > { %v1146_v37 = vmul.f32 -1.442695, %v833_v29  ;;  %v834_v38 = vadd.f32 %v1385_v55, %v768_v30  ;;  %v770_v39 = vadd.f32 %v769_v34, %v537_v53  ;;  %1206 = vpow2.f32 %v1151_v31  ;;  %v943_v29 = vld [vmem:[%s1415_s13 + $0x10] sm:$0xff]  ;;  %v949_v31 = vld [vmem:[%s1415_s13 + $0x40] sm:$0xff] }
  0xf9   : > { %v771_v42 = vpop.f32.mrf.mxu0  ;;  %1208 = vpow2.f32 %v1152_v32  ;;  %v1148_v47 = vmul.f32 -1.442695, %v835_v40  ;;  %v836_v48 = vadd.f32 %v1385_v55, %v811_v41  ;;  %v813_v49 = vadd.f32 %v812_v43, %v1387_v57  ;;  %v814_v50 = vpop.f32.mrf.mxu1  ;;  %v950_v40 = vld [vmem:[%s1415_s13 + $0x48] sm:$0xff]  ;;  %v951_v43 = vld [vmem:[%s1415_s13 + $0x50] sm:$0xff] }
  0xfa   : > { %v1147_v44 = vmul.f32 -1.442695, %v834_v38  ;;  %v841_v45 = vadd.f32 %v1392_v2, %v770_v39  ;;  %v772_v46 = vadd.f32 %v771_v42, %v539_v56  ;;  %1210 = vpow2.f32 %v1153_v36 }
  0xfb   : > { %1212 = vpow2.f32 %v1146_v37  ;;  %v815_v53 = vadd.f32 %v814_v50, %v1389_v58  ;;  %v1149_v54 = vmul.f32 -1.442695, %v836_v48  ;;  %v843_v59 = vadd.f32 %v1392_v2, %v813_v49  ;;  %v945_v49 = vld [vmem:[%s1415_s13 + $0x20] sm:$0xff] }
  0xfc   : > { %v1154_v51 = vmul.f32 -1.442695, %v841_v45  ;;  %v842_v52 = vadd.f32 %v1392_v2, %v772_v46  ;;  %1214 = vpow2.f32 %v1147_v44  ;;  %v952_v45 = vld [vmem:[%s1415_s13 + $0x58] sm:$0xff] }
  0xfd   : > { %1216 = vpow2.f32 %v1148_v47  ;;  %v1156_v61 = vmul.f32 -1.442695, %v843_v59  ;;  %v844_v55 = vadd.f32 %v1392_v2, %v815_v53  ;;  %v947_v59 = vld [vmem:[%s1415_s13 + $0x30] sm:$0xff] }
  0xfe   : > { %v1155_v60 = vmul.f32 -1.442695, %v842_v52  ;;  %1218 = vpow2.f32 %v1154_v51  ;;  %v946_v52 = vld [vmem:[%s1415_s13 + $0x28] sm:$0xff] }
  0xff   : > { %v1197_v56 = vpop.eup %1196  ;;  %1220 = vpow2.f32 %v1149_v54  ;;  %v1157_v5 = vmul.f32 -1.442695, %v844_v55 }
 0x100   : > { %v893_v62 = vadd.f32 1.0, %v1197_v56  ;;  %1222 = vpow2.f32 %v1155_v60 }
 0x101   : > { %v1199_v57 = vpop.eup %1198 }
 0x102   : > { %v1201_v63 = vpop.eup %1200  ;;  %1224 = vrcp.f32 %v893_v62  ;;  %v894_v0 = vadd.f32 1.0, %v1199_v57  ;;  %v948_v57 = vld [vmem:[%s1415_s13 + $0x38] sm:$0xff] }
 0x103   : > { %v1203_v58 = vpop.eup %1202  ;;  %v895_v1 = vadd.f32 1.0, %v1201_v63  ;;  %1226 = vpow2.f32 %v1156_v61  ;;  %v953_v61 = vld [vmem:[%s1415_s13 + $0x60] sm:$0xff] }
 0x104   : > { %v1205_v3 = vpop.eup %1204  ;;  %1228 = vrcp.f32 %v894_v0  ;;  %v901_v4 = vadd.f32 1.0, %v1203_v58  ;;  %v954_v58 = vld [vmem:[%s1415_s13 + $0x68] sm:$0xff] }
 0x105   : > { %1230 = vrcp.f32 %v895_v1  ;;  %v896_v6 = vadd.f32 1.0, %v1205_v3  ;;  %v1207_v7 = vpop.eup %1206 }
 0x106   : > { %1232 = vrcp.f32 %v901_v4  ;;  %v1209_v8 = vpop.eup %1208  ;;  %v902_v2 = vadd.f32 1.0, %v1207_v7 }
 0x107   : > { %1234 = vrcp.f32 %v896_v6  ;;  %v1211_v9 = vpop.eup %1210  ;;  %v903_v10 = vadd.f32 1.0, %v1209_v8  ;;  %v955_v6 = vld [vmem:[%s1415_s13 + $0x70] sm:$0xff] }
 0x108   : > { %1236 = vpow2.f32 %v1157_v5  ;;  %v1213_v11 = vpop.eup %1212  ;;  %v904_v12 = vadd.f32 1.0, %v1211_v9  ;;  %v956_v9 = vld [vmem:[%s1415_s13 + $0x78] sm:$0xff] }
 0x109   : > { %1238 = vrcp.f32 %v902_v2  ;;  %v1215_v13 = vpop.eup %1214  ;;  %v897_v14 = vadd.f32 1.0, %v1213_v11 }
 0x10a   : > { %1240 = vrcp.f32 %v903_v10  ;;  %v1217_v15 = vpop.eup %1216  ;;  %v898_v16 = vadd.f32 1.0, %v1215_v13 }
 0x10b   : > { %1242 = vrcp.f32 %v904_v12  ;;  %v1219_v17 = vpop.eup %1218  ;;  %v899_v18 = vadd.f32 1.0, %v1217_v15 }
 0x10c   : > { %1244 = vrcp.f32 %v897_v14  ;;  %v1221_v19 = vpop.eup %1220  ;;  %v905_v21 = vadd.f32 1.0, %v1219_v17 }
 0x10d   : > { %1246 = vrcp.f32 %v898_v16  ;;  %v1223_v22 = vpop.eup %1222  ;;  %v900_v23 = vadd.f32 1.0, %v1221_v19 }
 0x10e   : > { %1248 = vrcp.f32 %v899_v18  ;;  %v906_v26 = vadd.f32 1.0, %v1223_v22 }
 0x10f   : > { %v1225_v24 = vpop.eup %1224  ;;  %1250 = vrcp.f32 %v905_v21 }
 0x110   : > { %v1227_v27 = vpop.eup %1226  ;;  %v957_v28 = vmul.f32 %v1225_v24, %v941_v20  ;;  %1252 = vrcp.f32 %v900_v23 }
 0x111   : > { %v1229_v30 = vpop.eup %1228  ;;  %1254 = vrcp.f32 %v906_v26  ;;  %v907_v32 = vadd.f32 1.0, %v1227_v27 }
 0x112   : > { %v1231_v33 = vpop.eup %1230  ;;  %973 = vst [vmem:[%s1421_s16] sm:$0xff] %v957_v28  ;;  %v958_v34 = vmul.f32 %v1229_v30, %v942_v25 }
 0x113   : > { %v1233_v36 = vpop.eup %1232  ;;  %v959_v37 = vmul.f32 %v1231_v33, %v943_v29  ;;  %1256 = vrcp.f32 %v907_v32 }
 0x114   : > { %v1235_v38 = vpop.eup %1234  ;;  %974 = vst [vmem:[%s1421_s16 + $0x8] sm:$0xff] %v958_v34  ;;  %v965_v39 = vmul.f32 %v1233_v36, %v949_v31 }
 0x115   : > { %v1237_v41 = vpop.eup %1236  ;;  %975 = vst [vmem:[%s1421_s16 + $0x10] sm:$0xff] %v959_v37  ;;  %v960_v42 = vmul.f32 %v1235_v38, %v944_v35 }
 0x116   : > { %v1239_v44 = vpop.eup %1238  ;;  %981 = vst [vmem:[%s1421_s16 + $0x40] sm:$0xff] %v965_v39  ;;  %v908_v46 = vadd.f32 1.0, %v1237_v41 }
 0x117   : > { %v1241_v47 = vpop.eup %1240  ;;  %976 = vst [vmem:[%s1421_s16 + $0x18] sm:$0xff] %v960_v42  ;;  %v966_v48 = vmul.f32 %v1239_v44, %v950_v40 }
 0x118   : > { %v1243_v50 = vpop.eup %1242  ;;  %v967_v51 = vmul.f32 %v1241_v47, %v951_v43  ;;  %1258 = vrcp.f32 %v908_v46 }
 0x119   : > { %v1245_v53 = vpop.eup %1244  ;;  %982 = vst [vmem:[%s1421_s16 + $0x48] sm:$0xff] %v966_v48  ;;  %v968_v54 = vmul.f32 %v1243_v50, %v952_v45 }
 0x11a   : > { %v1247_v60 = vpop.eup %1246  ;;  %983 = vst [vmem:[%s1421_s16 + $0x50] sm:$0xff] %v967_v51  ;;  %v961_v56 = vmul.f32 %v1245_v53, %v945_v49 }
 0x11b   : > { %v1249_v62 = vpop.eup %1248  ;;  %984 = vst [vmem:[%s1421_s16 + $0x58] sm:$0xff] %v968_v54  ;;  %v962_v55 = vmul.f32 %v1247_v60, %v946_v52 }
 0x11c   : > { %v1251_v63 = vpop.eup %1250  ;;  %977 = vst [vmem:[%s1421_s16 + $0x20] sm:$0xff] %v961_v56  ;;  %v963_v0 = vmul.f32 %v1249_v62, %v947_v59 }
 0x11d   : > { %v1253_v1 = vpop.eup %1252  ;;  %978 = vst [vmem:[%s1421_s16 + $0x28] sm:$0xff] %v962_v55  ;;  %v969_v3 = vmul.f32 %v1251_v63, %v953_v61 }
 0x11e   : > { %v1255_v4 = vpop.eup %1254  ;;  %979 = vst [vmem:[%s1421_s16 + $0x30] sm:$0xff] %v963_v0  ;;  %v964_v5 = vmul.f32 %v1253_v1, %v948_v57 }
 0x11f   : > { %985 = vst [vmem:[%s1421_s16 + $0x60] sm:$0xff] %v969_v3  ;;  %v970_v7 = vmul.f32 %v1255_v4, %v954_v58 }
 0x120   : > { %v1257_v8 = vpop.eup %1256  ;;  %980 = vst [vmem:[%s1421_s16 + $0x38] sm:$0xff] %v964_v5 }
 0x121   : > { %986 = vst [vmem:[%s1421_s16 + $0x68] sm:$0xff] %v970_v7  ;;  %v971_v2 = vmul.f32 %v1257_v8, %v955_v6 }
 0x123   : > { %987 = vst [vmem:[%s1421_s16 + $0x70] sm:$0xff] %v971_v2 }
 0x125   : > { %v1259_v10 = vpop.eup %1258 }
 0x126   : > { %v972_v11 = vmul.f32 %v1259_v10, %v956_v9 }
 0x128   : > { %988 = vst [vmem:[%s1421_s16 + $0x78] sm:$0xff] %v972_v11 }
 0x129 PF: > { %s15_s20 = sadd.s32 1, %s1282_s20   ;;  %s1469_s18 = smov %s1278_s19 }
 0x12a   : > { %p12_p5 = scmp.ge.s32.totalorder %s15_s20, 4   ;;  %s1470_s19 = smov %s1472_s21 }
 0x12c   :  { %14 = sbr.rel (!%p12_p5) target bundleno = 2 (0x2), region = 76 }

</bundles_post_ra>
